<compile_context>
chip_gen: v6e
topology: v6e:2x2x1
jax: 0.10.0
libtpu: 0.0.40
codegen_flags: <defaults>
</compile_context>

<pallas_src>
import numpy as np
import jax
import jax.numpy as jnp
from jax.experimental import pallas as pl
from jax.experimental.pallas import tpu as pltpu

NUM_JOINTS = 24
NUM_SHAPES = 10
NUM_POSE_FEAT = (NUM_JOINTS - 1) * 9  # 207

# Standard SMPL kinematic tree (parents[0] = -1 as in the reference module).
SMPL_PARENTS = np.array(
    [-1, 0, 0, 0, 1, 2, 3, 4, 5, 6, 7, 8, 9, 9, 9, 12, 13, 14, 16, 17, 18,
     19, 20, 21], dtype=np.int64)


def _round_up(x, m):
    return (x + m - 1) // m * m


# ----------------------------- Pallas kernels ------------------------------

def _shape_pose_kernel(betas_ref, pf_ref, vt_ref, sd_ref, pd_ref,
                       vs_ref, vp_ref):
    """Blend shapes + pose-corrective offsets for one flat V*3 tile.

    betas  (B, 10)    bf16   pf (B, 207) bf16
    vt     (1, TILE)  f32    sd (10, TILE) bf16   pd (207, TILE) bf16
    vs/vp  (B, TILE)  f32
    """
    shape_off = jnp.dot(betas_ref[...], sd_ref[...],
                        preferred_element_type=jnp.float32)       # (B, TILE)
    v_shaped = vt_ref[...] + shape_off                            # bcast (1,T)
    pose_off = jnp.dot(pf_ref[...], pd_ref[...],
                       preferred_element_type=jnp.float32)        # (B, TILE)
    vs_ref[...] = v_shaped
    vp_ref[...] = v_shaped + pose_off


def _skin_kernel(vp_ref, wT_ref, a_ref, out_ref):
    """LBS skinning for one vertex tile in transposed (coord, vertex) layout.

    vp  (1, 3, TILE_V) f32 : posed vertices, coord rows on sublanes
    wT  (24, TILE_V)   f32 : skinning weights, vertices lane-dense
    a   (1, 12, 24)    f32 : top 3 rows of per-joint world transforms,
                             row r = 4*i + c  ->  A_world[j, i, c]
    out (1, 3, TILE_V) f32 : world-space vertices
    """
    # Per-vertex blended transform rows: Tt[r, v] = sum_j A[r, j] * w[v, j].
    tt = jnp.dot(a_ref[0], wT_ref[...],
                 preferred_element_type=jnp.float32)              # (12, TILE_V)
    vp = vp_ref[0]                                                # (3, TILE_V)
    x = vp[0:1, :]
    y = vp[1:2, :]
    z = vp[2:3, :]
    # 12 full-width VPU FMAs; each result row stored directly (lane-dense).
    out_ref[0, 0:1, :] = tt[0:1] * x + tt[1:2] * y + tt[2:3] * z + tt[3:4]
    out_ref[0, 1:2, :] = tt[4:5] * x + tt[5:6] * y + tt[6:7] * z + tt[7:8]
    out_ref[0, 2:3, :] = tt[8:9] * x + tt[9:10] * y + tt[10:11] * z + tt[11:12]


# ------------------------------ Pallas wrappers -----------------------------

def shape_pose_offsets(betas, pose_feat, v_template_flat, shapedirs_kT,
                       posedirs_kT, tile):
    B = betas.shape[0]
    F = v_template_flat.shape[-1]                 # 3 * V_pad
    nt = F // tile
    vs, vp = pl.pallas_call(
        _shape_pose_kernel,
        out_shape=(jax.ShapeDtypeStruct((B, F), jnp.float32),
                   jax.ShapeDtypeStruct((B, F), jnp.float32)),
        grid_spec=pltpu.PrefetchScalarGridSpec(
            num_scalar_prefetch=0,
            grid=(nt,),
            in_specs=[
                pl.BlockSpec((B, NUM_SHAPES), lambda t: (0, 0)),
                pl.BlockSpec((B, NUM_POSE_FEAT), lambda t: (0, 0)),
                pl.BlockSpec((1, tile), lambda t: (0, t)),
                pl.BlockSpec((NUM_SHAPES, tile), lambda t: (0, t)),
                pl.BlockSpec((NUM_POSE_FEAT, tile), lambda t: (0, t)),
            ],
            out_specs=[
                pl.BlockSpec((B, tile), lambda t: (0, t)),
                pl.BlockSpec((B, tile), lambda t: (0, t)),
            ]),
        compiler_params=pltpu.CompilerParams(
            dimension_semantics=("parallel",)),
    )(betas, pose_feat, v_template_flat, shapedirs_kT, posedirs_kT)
    return vs, vp                                   # (B, 3*V_pad) each


def skin_vertices(v_posed_t, weights_T, A_world12, tile_v):
    B, _, V_pad = v_posed_t.shape
    nv = V_pad // tile_v
    return pl.pallas_call(
        _skin_kernel,
        out_shape=jax.ShapeDtypeStruct((B, 3, V_pad), jnp.float32),
        grid_spec=pltpu.PrefetchScalarGridSpec(
            num_scalar_prefetch=0,
            grid=(nv, B),          # v outer so the weights tile stays resident
            in_specs=[
                pl.BlockSpec((1, 3, tile_v), lambda v, b: (b, 0, v)),
                pl.BlockSpec((NUM_JOINTS, tile_v), lambda v, b: (0, v)),
                pl.BlockSpec((1, 12, NUM_JOINTS), lambda v, b: (b, 0, 0)),
            ],
            out_specs=pl.BlockSpec((1, 3, tile_v), lambda v, b: (b, 0, v))),
        compiler_params=pltpu.CompilerParams(
            dimension_semantics=("parallel", "parallel")),
    )(v_posed_t, weights_T, A_world12)              # (B, 3, V_pad)


# ------------------------------- JAX glue ----------------------------------

def batch_rodrigues(rot_vecs, eps=1e-8):
    """Axis-angle (N, 3) -> rotation matrices (N, 3, 3)."""
    angle = jnp.linalg.norm(rot_vecs + eps, axis=1, keepdims=True)   # (N, 1)
    rot_dir = rot_vecs / angle
    cos = jnp.cos(angle)[:, None]                                    # (N,1,1)
    sin = jnp.sin(angle)[:, None]
    rx, ry, rz = jnp.split(rot_dir, 3, axis=1)
    zeros = jnp.zeros_like(rx)
    K = jnp.concatenate(
        [zeros, -rz, ry, rz, zeros, -rx, -ry, rx, zeros],
        axis=1).reshape(-1, 3, 3)
    ident = jnp.eye(3, dtype=rot_vecs.dtype)[None]
    return ident + sin * K + (1.0 - cos) * jnp.matmul(K, K)


def batch_rigid_transform(rot_mats, joints, parents):
    """rot_mats (B,J,3,3), joints (B,J,3) -> posed joints, relative (skinning)
    transforms, absolute transforms."""
    B, J = joints.shape[0], joints.shape[1]
    dtype = joints.dtype
    rel_joints = joints.at[:, 1:].add(-joints[:, parents[1:]])
    bottom = jnp.broadcast_to(
        jnp.array([0.0, 0.0, 0.0, 1.0], dtype=dtype), (B, J, 1, 4))
    transforms_mat = jnp.concatenate(
        [jnp.concatenate([rot_mats, rel_joints[..., None]], axis=-1), bottom],
        axis=-2)                                                     # (B,J,4,4)
    chain = [transforms_mat[:, 0]]
    for i in range(1, J):
        chain.append(jnp.matmul(chain[int(parents[i])], transforms_mat[:, i]))
    transforms = jnp.stack(chain, axis=1)                            # (B,J,4,4)
    posed_joints = transforms[:, :, :3, 3]
    joints_homo = jnp.concatenate(
        [joints, jnp.zeros((B, J, 1), dtype=dtype)], axis=-1)[..., None]
    t = jnp.matmul(transforms, joints_homo)                          # (B,J,4,1)
    rel_transforms = transforms - jnp.pad(
        t, ((0, 0), (0, 0), (0, 0), (3, 0)))
    return posed_joints, rel_transforms, transforms


class SMPLLayerPallas:
    """JAX/Pallas re-implementation of SMPLlayer.forward with synthetic
    (deterministically initialized) model buffers."""

    TILE_V = 1024          # vertices per skinning tile; flat tile = 3*TILE_V

    def __init__(self, v_template, shapedirs, posedirs, J_regressor, weights,
                 parents):
        V = int(v_template.shape[0])
        self.V = V
        V_pad = _round_up(V, self.TILE_V)
        self.V_pad = V_pad
        self.tile_a = 3 * self.TILE_V

        v_template = np.asarray(v_template, np.float32)      # (V, 3)
        shapedirs = np.asarray(shapedirs, np.float32)        # (V, 3, 10)
        posedirs = np.asarray(posedirs, np.float32)          # (V, 3, 207)
        J_regressor = np.asarray(J_regressor, np.float32)    # (24, V)
        weights = np.asarray(weights, np.float32)            # (V, 24)

        # Coordinate-major flat layout "k*V_pad + v": vertices lane-dense,
        # padded to a multiple of TILE_V so every tile is exact / unmasked.
        vt = np.zeros((3, V_pad), np.float32)
        vt[:, :V] = v_template.T
        self.v_template_flat = jnp.asarray(vt.reshape(1, 3 * V_pad))

        sd = np.zeros((NUM_SHAPES, 3, V_pad), np.float32)
        sd[:, :, :V] = shapedirs.transpose(2, 1, 0)
        # bf16 model constants (HBM-bandwidth bound stream); f32 accumulation.
        self.shapedirs_kT = jnp.asarray(
            sd.reshape(NUM_SHAPES, 3 * V_pad), jnp.bfloat16)

        pd = np.zeros((NUM_POSE_FEAT, 3, V_pad), np.float32)
        pd[:, :, :V] = posedirs.transpose(2, 1, 0)
        self.posedirs_kT = jnp.asarray(
            pd.reshape(NUM_POSE_FEAT, 3 * V_pad), jnp.bfloat16)

        jr = np.zeros((NUM_JOINTS, V_pad), np.float32)
        jr[:, :V] = J_regressor
        self.J_regressor_pad = jnp.asarray(jr)

        wt = np.zeros((NUM_JOINTS, V_pad), np.float32)
        wt[:, :V] = weights.T
        self.weights_T = jnp.asarray(wt)                     # (24, V_pad) f32

        self.parents = np.asarray(parents)
        # faces / faces_tensor are not used in forward -> omitted.

    def forward(self, poses, shapes, Rh=None, Th=None, scale=1.0):
        poses = jnp.asarray(poses, jnp.float32)
        shapes = jnp.asarray(shapes, jnp.float32)
        bn = poses.shape[0]
        if Rh is None:
            Rh = jnp.zeros((bn, 3), jnp.float32)
        Rh = jnp.asarray(Rh, jnp.float32)
        Th = jnp.asarray(Th, jnp.float32)
        if shapes.shape[0] < bn:
            shapes = jnp.broadcast_to(shapes, (bn, shapes.shape[1]))

        rot = batch_rodrigues(Rh)                                   # (bn,3,3)
        rot_mats = batch_rodrigues(
            poses.reshape(-1, 3)).reshape(bn, NUM_JOINTS, 3, 3)
        ident = jnp.eye(3, dtype=jnp.float32)
        pose_feature = (rot_mats[:, 1:] - ident).reshape(bn, NUM_POSE_FEAT)

        # Pallas kernel A: blend shapes + pose correctives (tiled over V*3,
        # batch folded into the matmul M dimension).
        v_shaped_flat, v_posed_flat = shape_pose_offsets(
            shapes.astype(jnp.bfloat16), pose_feature.astype(jnp.bfloat16),
            self.v_template_flat, self.shapedirs_kT, self.posedirs_kT,
            self.tile_a)
        v_shaped_t = v_shaped_flat.reshape(bn, 3, self.V_pad)
        v_posed_t = v_posed_flat.reshape(bn, 3, self.V_pad)

        # Rest joints + 24-joint sequential kinematic chain in plain JAX.
        # TODO(synk): J_rest could be fused into kernel A as an accumulated
        # (B,24,3) output; kept in XLA since the traffic is ~166 KB/batch.
        J_rest = jnp.einsum('jv,bkv->bjk', self.J_regressor_pad, v_shaped_t)
        J_posed, A_rel, A_abs = batch_rigid_transform(
            rot_mats, J_rest, self.parents)

        # Fold the global rot/scale/Th into the per-joint skinning transforms
        # so kernel B directly produces world-space vertices (equivalent to
        # skinning then rot*scale + Th as in the reference).
        G = jnp.tile(jnp.eye(4, dtype=jnp.float32)[None], (bn, 1, 1))
        G = G.at[:, :3, :3].set(rot * scale)
        G = G.at[:, :3, 3].set(Th)
        bones_transform = jnp.einsum('bij,bnjk->bnik', G, A_rel)   # (bn,24,4,4)
        A12 = bones_transform[:, :, :3, :].transpose(0, 2, 3, 1).reshape(
            bn, 12, NUM_JOINTS)                                     # (bn,12,24)

        # Pallas kernel B: LBS skinning in transposed lane-dense layout.
        verts_t = skin_vertices(v_posed_t, self.weights_T, A12, self.TILE_V)
        vertices = jnp.transpose(verts_t[:, :, :self.V], (0, 2, 1))  # (bn,V,3)

        joints = jnp.einsum('bjk,bik->bji', J_posed, rot) * scale \
            + Th[:, None, :]

        # TODO(synk): the exact lbs() joints/bones transform convention in
        # tools/process_zju is not shown; here joints_transform = global @
        # absolute bone transforms and bones_transform = global @ relative
        # (skinning) transforms (reference builds a single 4x4, bn==1 only).
        joints_transform = jnp.einsum('bij,bnjk->bnik', G, A_abs)
        return vertices, joints, joints_transform, bones_transform


# ---------------------------------- main ------------------------------------

if __name__ == "__main__":
    key = jax.random.PRNGKey(0)
    keys = jax.random.split(key, 10)

    V = 128  # small synthetic vertex count (real SMPL: 6890)
    v_template = jax.random.normal(keys[0], (V, 3), jnp.float32)
    shapedirs = 0.01 * jax.random.normal(keys[1], (V, 3, NUM_SHAPES),
                                         jnp.float32)
    posedirs = 0.01 * jax.random.normal(keys[2], (V, 3, NUM_POSE_FEAT),
                                        jnp.float32)
    J_regressor = jax.nn.softmax(
        jax.random.normal(keys[3], (NUM_JOINTS, V), jnp.float32), axis=-1)
    weights = jax.nn.softmax(
        jax.random.normal(keys[4], (V, NUM_JOINTS), jnp.float32), axis=-1)

    model = SMPLLayerPallas(v_template, shapedirs, posedirs, J_regressor,
                            weights, SMPL_PARENTS)

    B = 2
    poses = 0.2 * jax.random.normal(keys[5], (B, 72), jnp.float32)
    shapes = jax.random.normal(keys[6], (B, NUM_SHAPES), jnp.float32)
    Rh = 0.3 * jax.random.normal(keys[7], (B, 3), jnp.float32)
    Th = jax.random.normal(keys[8], (B, 3), jnp.float32)

    verts, joints, joints_T, bones_T = model.forward(
        poses, shapes, Rh, Th, scale=1.0)
    jax.block_until_ready((verts, joints, joints_T, bones_T))

    assert verts.shape == (B, V, 3)
    assert joints.shape == (B, NUM_JOINTS, 3)
    assert joints_T.shape == (B, NUM_JOINTS, 4, 4)
    assert bones_T.shape == (B, NUM_JOINTS, 4, 4)
    assert bool(jnp.all(jnp.isfinite(verts)))
    print("KERNEL_OK")
</pallas_src>

<mosaic_0001>
module attributes {stable_mosaic.version = 11 : i64} {
  func.func @_shape_pose_kernel(%arg0: i32, %arg1: memref<2x10xbf16, #tpu.memory_space<vmem>>, %arg2: memref<2x207xbf16, #tpu.memory_space<vmem>>, %arg3: memref<1x3072xf32, #tpu.memory_space<vmem>>, %arg4: memref<10x3072xbf16, #tpu.memory_space<vmem>>, %arg5: memref<207x3072xbf16, #tpu.memory_space<vmem>>, %arg6: memref<2x3072xf32, #tpu.memory_space<vmem>>, %arg7: memref<2x3072xf32, #tpu.memory_space<vmem>>) attributes {dimension_semantics = [#tpu.dimension_semantics<parallel>], iteration_bounds = array<i64: 1>, scalar_prefetch = 0 : i64, scratch_operands = 0 : i64, tpu.core_type = #tpu.core_type<tc>, window_params = [{pipeline_mode = #tpu.pipeline_mode<synchronous>, transform_indices = @transform_0, window_bounds = array<i64: 2, 10>}, {pipeline_mode = #tpu.pipeline_mode<synchronous>, transform_indices = @transform_1, window_bounds = array<i64: 2, 207>}, {transform_indices = @transform_2, window_bounds = array<i64: 1, 3072>}, {transform_indices = @transform_3, window_bounds = array<i64: 10, 3072>}, {transform_indices = @transform_4, window_bounds = array<i64: 207, 3072>}, {transform_indices = @transform_5, window_bounds = array<i64: 2, 3072>}, {transform_indices = @transform_6, window_bounds = array<i64: 2, 3072>}]} {
    %c0 = arith.constant 0 : index
    %c0_0 = arith.constant 0 : index
    %0 = vector.load %arg1[%c0, %c0_0] : memref<2x10xbf16, #tpu.memory_space<vmem>>, vector<2x10xbf16>
    %c0_1 = arith.constant 0 : index
    %c0_2 = arith.constant 0 : index
    %1 = vector.load %arg4[%c0_1, %c0_2] : memref<10x3072xbf16, #tpu.memory_space<vmem>>, vector<10x3072xbf16>
    %cst = arith.constant dense<0.000000e+00> : vector<2x3072xf32>
    %2 = tpu.matmul %0, %1, %cst {dimension_numbers = #tpu.dot_dimension_numbers<[1], [0], [0], [1], [0, 0, 1, 1], [], []>} : vector<2x10xbf16>, vector<10x3072xbf16>, vector<2x3072xf32> -> vector<2x3072xf32>
    %c0_3 = arith.constant 0 : index
    %c0_4 = arith.constant 0 : index
    %3 = vector.load %arg3[%c0_3, %c0_4] : memref<1x3072xf32, #tpu.memory_space<vmem>>, vector<1x3072xf32>
    %4 = vector.broadcast %3 : vector<1x3072xf32> to vector<2x3072xf32>
    %5 = arith.addf %4, %2 : vector<2x3072xf32>
    %c0_5 = arith.constant 0 : index
    %c0_6 = arith.constant 0 : index
    %6 = vector.load %arg2[%c0_5, %c0_6] : memref<2x207xbf16, #tpu.memory_space<vmem>>, vector<2x207xbf16>
    %c0_7 = arith.constant 0 : index
    %c0_8 = arith.constant 0 : index
    %7 = vector.load %arg5[%c0_7, %c0_8] : memref<207x3072xbf16, #tpu.memory_space<vmem>>, vector<207x3072xbf16>
    %cst_9 = arith.constant dense<0.000000e+00> : vector<2x3072xf32>
    %8 = tpu.matmul %6, %7, %cst_9 {dimension_numbers = #tpu.dot_dimension_numbers<[1], [0], [0], [1], [0, 0, 1, 1], [], []>} : vector<2x207xbf16>, vector<207x3072xbf16>, vector<2x3072xf32> -> vector<2x3072xf32>
    %c0_10 = arith.constant 0 : index
    %c0_11 = arith.constant 0 : index
    %9 = vector.load %arg6[%c0_10, %c0_11] : memref<2x3072xf32, #tpu.memory_space<vmem>>, vector<2x3072xf32>
    tpu.vector_store %arg6[%c0_10, %c0_11], %5 {strides = array<i32>} : memref<2x3072xf32, #tpu.memory_space<vmem>>, vector<2x3072xf32>,
    %10 = arith.addf %5, %8 : vector<2x3072xf32>
    %c0_12 = arith.constant 0 : index
    %c0_13 = arith.constant 0 : index
    %11 = vector.load %arg7[%c0_12, %c0_13] : memref<2x3072xf32, #tpu.memory_space<vmem>>, vector<2x3072xf32>
    tpu.vector_store %arg7[%c0_12, %c0_13], %10 {strides = array<i32>} : memref<2x3072xf32, #tpu.memory_space<vmem>>, vector<2x3072xf32>,
    return
  }
  func.func @transform_0(%arg0: i32) -> (i32, i32) {
    %c0_i32 = arith.constant 0 : i32
    %c0_i32_0 = arith.constant 0 : i32
    %c0_i32_1 = arith.constant 0 : i32
    return %c0_i32, %c0_i32_0 : i32, i32
  }
  func.func @transform_1(%arg0: i32) -> (i32, i32) {
    %c0_i32 = arith.constant 0 : i32
    %c0_i32_0 = arith.constant 0 : i32
    %c0_i32_1 = arith.constant 0 : i32
    return %c0_i32, %c0_i32_0 : i32, i32
  }
  func.func @transform_2(%arg0: i32) -> (i32, i32) {
    %c0_i32 = arith.constant 0 : i32
    %c0_i32_0 = arith.constant 0 : i32
    return %c0_i32, %arg0 : i32, i32
  }
  func.func @transform_3(%arg0: i32) -> (i32, i32) {
    %c0_i32 = arith.constant 0 : i32
    %c0_i32_0 = arith.constant 0 : i32
    return %c0_i32, %arg0 : i32, i32
  }
  func.func @transform_4(%arg0: i32) -> (i32, i32) {
    %c0_i32 = arith.constant 0 : i32
    %c0_i32_0 = arith.constant 0 : i32
    return %c0_i32, %arg0 : i32, i32
  }
  func.func @transform_5(%arg0: i32) -> (i32, i32) {
    %c0_i32 = arith.constant 0 : i32
    %c0_i32_0 = arith.constant 0 : i32
    return %c0_i32, %arg0 : i32, i32
  }
  func.func @transform_6(%arg0: i32) -> (i32, i32) {
    %c0_i32 = arith.constant 0 : i32
    %c0_i32_0 = arith.constant 0 : i32
    return %c0_i32, %arg0 : i32, i32
  }
}

</mosaic_0001>

<bundles_post_ra>
// kernel: tpu_custom_call.1
= control target key start
LH: loop header
LB: loop body
LE: loop exit
PB: predicated region body
PF: predicated region fallthrough
CT: control target
= control target key end

     0   :  { %12 = vsyncpa [#allocation3], 0  ;;  %s4663_s0 = inlined_call_operand.hbm [shape: bf16[2,10], index: 0, kind: input, shape index: {}]   ;;  %s4664_s1 = inlined_call_operand.hbm [shape: bf16[2,207], index: 1, kind: input, shape index: {}]   ;;  %s4665_s2 = inlined_call_operand.hbm [shape: f32[1,3072], index: 2, kind: input, shape index: {}]   ;;  %s4666_s3 = inlined_call_operand.hbm [shape: bf16[10,3072], index: 3, kind: input, shape index: {}]   ;;  %s4667_s4 = inlined_call_operand.hbm [shape: bf16[207,3072], index: 4, kind: input, shape index: {}]   ;;  %s4668_s5 = inlined_call_operand.hbm [shape: f32[2,3072], index: 5, kind: output, shape index: {0}]   ;;  %s4669_s6 = inlined_call_operand.hbm [shape: f32[2,3072], index: 6, kind: output, shape index: {1}]  }
   0x1   :  { %13 = vsyncpa [#allocation6], 0 }
   0x2   :  { %14 = vsyncpa [#allocation9], 0 }
   0x3   :  { %15 = vsyncpa [#allocation4], 0 }
   0x4   :  { %16 = vsyncpa [#allocation13], 0  ;;  %s4239_s21 = smov [#allocation5]   ;;  %s4240_s23 = smov [#allocation8]  }
   0x5   :  { %s33_s22 = sshll.u32 %s4239_s21, 4  ;;  %s52_s24 = sshll.u32 %s4240_s23, 4  ;;  %s34_s22 = int_to_ptr.vmem [resolvable:$true] %s33_s22  ;;  %s53_s24 = int_to_ptr.vmem [resolvable:$true] %s52_s24 }
   0x6   :  { %s4097_s25 = scalar_lea.vmem %s34_s22, 32  ;;  %p4102_p1 = scmp.lt.s32.totalorder %s34_s22, %s34_s22 }
   0x7   :  { %p4098_p0 = scmp.ne.s32.totalorder %s34_s22, %s4097_s25  ;;  %p4103_p2 = scmp.lt.s32.totalorder %s4097_s25, %s4097_s25 }
   0x9   :  { %p4104_p3 = por %p4103_p2, %p4102_p1 }
   0xb   :  { %p4105_p4 = pnand %p4104_p3, %p4098_p0 }
   0xd   :  { %4108 = shalt.err (!%p4105_p4)
}
   0xe   :  { %36 = dma.hbm_to_vmem [thread:$0]  %s4664_s1, 32, %s34_s22, [#allocation6]  }
   0xf   :  { %s4117_s28 = scalar_lea.vmem %s53_s24, 3072  ;;  %p4122_p6 = scmp.lt.s32.totalorder %s53_s24, %s53_s24 }
  0x10   :  { %p4118_p5 = scmp.ne.s32.totalorder %s53_s24, %s4117_s28  ;;  %p4123_p7 = scmp.lt.s32.totalorder %s4117_s28, %s4117_s28 }
  0x12   :  { %p4124_p8 = por %p4123_p7, %p4122_p6 }
  0x14   :  { %p4125_p9 = pnand %p4124_p8, %p4118_p5 }
  0x16   :  { %4128 = shalt.err (!%p4125_p9)
}
  0x17   :  { %s4241_s29 = smov 1536   ;;  %s4242_s30 = smov 96  }
  0x18   :  { %58 = dma.hbm_to_vmem [thread:$0]  %s4666_s3, 3072, %s53_s24, [#allocation9], %s4241_s29, %s4241_s29, %s4242_s30  }
  0x19   :  { %s4243_s9 = smov [#allocation2]   ;;  %s4244_s11 = smov [#allocation7]  }
  0x1a   :  { %s23_s10 = sshll.u32 %s4243_s9, 4  ;;  %s43_s1 = sshll.u32 %s4244_s11, 4  ;;  %s24_s10 = int_to_ptr.vmem [resolvable:$true] %s23_s10  ;;  %s44_s1 = int_to_ptr.vmem [resolvable:$true] %s43_s1 }
  0x1b   :  { %s4137_s12 = scalar_lea.vmem %s24_s10, 16  ;;  %s4141_s13 = scalar_lea.vmem %s24_s10, 32 }
  0x1c   :  { %p4138_p10 = scmp.ne.s32.totalorder %s24_s10, %s4137_s12  ;;  %p4142_p11 = scmp.lt.s32.totalorder %s24_s10, %s24_s10 }
  0x1d   :  { %p4143_p12 = scmp.lt.s32.totalorder %s4141_s13, %s4137_s12 }
  0x1f   :  { %p4144_p13 = por %p4143_p12, %p4142_p11 }
  0x21   :  { %p4145_p0 = pnand %p4144_p13, %p4138_p10 }
  0x23   :  { %4148 = shalt.err (!%p4145_p0)
}
  0x24   :  { %26 = dma.hbm_to_vmem [thread:$0]  %s4663_s0, 16, %s24_s10, [#allocation3]  }
  0x25   :  { %s4157_s16 = scalar_lea.vmem %s44_s1, 384  ;;  %p4162_p2 = scmp.lt.s32.totalorder %s44_s1, %s44_s1 }
  0x26   :  { %p4158_p1 = scmp.ne.s32.totalorder %s44_s1, %s4157_s16  ;;  %p4163_p3 = scmp.lt.s32.totalorder %s4157_s16, %s4157_s16 }
  0x28   :  { %p4164_p4 = por %p4163_p3, %p4162_p2 }
  0x2a   :  { %p4165_p5 = pnand %p4164_p4, %p4158_p1 }
  0x2c   :  { %4168 = shalt.err (!%p4165_p5)
}
  0x2d   :  { %46 = dma.hbm_to_vmem [thread:$0]  %s4665_s2, 384, %s44_s1, [#allocation6]  }
  0x2e   :  { %s4245_s18 = smov [#allocation10]  }
  0x2f   :  { %s64_s19 = sshll.u32 %s4245_s18, 4  ;;  %s65_s19 = int_to_ptr.vmem [resolvable:$true] %s64_s19 }
  0x30   :  { %s4177_s20 = scalar_lea.vmem %s65_s19, 39936  ;;  %p4182_p7 = scmp.lt.s32.totalorder %s65_s19, %s65_s19 }
  0x31   :  { %p4178_p6 = scmp.ne.s32.totalorder %s65_s19, %s4177_s20  ;;  %p4183_p8 = scmp.lt.s32.totalorder %s4177_s20, %s4177_s20 }
  0x33   :  { %p4184_p9 = por %p4183_p8, %p4182_p7 }
  0x35   :  { %p4185_p10 = pnand %p4184_p9, %p4178_p6 }
  0x37   :  { %4188 = shalt.err (!%p4185_p10)
}
  0x38   :  { %70 = dma.hbm_to_vmem [thread:$0]  %s4667_s4, 39936, %s65_s19, [#allocation9], %s4241_s29, %s4241_s29, %s4242_s30  }
  0x39   :  { %4229 = dma.done.wait [#allocation3], 16  }
  0x3a   :  { %4230 = vsyncadd [#allocation3], 4294967280 }
  0x3b   :  { %4231 = dma.done.wait [#allocation6], 416  }
  0x3c   :  { %4232 = vsyncadd [#allocation6], 4294966880 }
  0x3d   :  { %4233 = dma.done.wait [#allocation9], 43008  }
  0x3e   :  { %4234 = vsyncadd [#allocation9], 4294924288  ;;  %v4246_v0 = vmov 0   ;;  %v88_v1 = vld [vmem:[#allocation8] sm:$0xff]  ;;  %vm212_vm0 = vcmask 1044480   ;;  %v89_v3 = vld [vmem:[#allocation8 + $0x8] sm:$0xff]  ;;  %v783_v60 = vlaneseq }
  0x3f   :  { %317 = vmatprep.mubr.bf16.mxu0 %v4246_v0  ;;  %358 = vmatprep.mubr.bf16.mxu1 %v4246_v0  ;;  %v100_v2 = vld [vmem:[#allocation8 + $0x60] sm:$0x11]  ;;  %v101_v5 = vld [vmem:[#allocation8 + $0x68] sm:$0x11]  ;;  %v90_v7 = vld [vmem:[#allocation8 + $0x10] sm:$0xff]  ;;  %vm208_vm1 = vcmask 80896  }
  0x40   :  { %v3704_v4 = vcombine.high %v88_v1, %v100_v2  ;;  %v3703_v6 = vcombine.low %v88_v1, %v100_v2  ;;  %v3706_v8 = vcombine.high %v89_v3, %v101_v5  ;;  %v3705_v9 = vcombine.low %v89_v3, %v101_v5  ;;  %v102_v10 = vld [vmem:[#allocation8 + $0x70] sm:$0x11]  ;;  %v91_v11 = vld [vmem:[#allocation8 + $0x18] sm:$0xff]  ;;  %v92_v17 = vld [vmem:[#allocation8 + $0x20] sm:$0xff]  ;;  %s4250_s2 = smov [#allocation11]  }
  0x41   :  { %v103_v12 = vld [vmem:[#allocation8 + $0x78] sm:$0x11]  ;;  %v3708_v14 = vcombine.high %v90_v7, %v102_v10  ;;  %v3707_v16 = vcombine.low %v90_v7, %v102_v10  ;;  %v104_v18 = vld [vmem:[#allocation8 + $0x80] sm:$0x11]  ;;  %v93_v22 = vld [vmem:[#allocation8 + $0x28] sm:$0xff]  ;;  %v4360_v7 = vshrl.u32 %v783_v60, 7 }
  0x42   :  { %3727 = vmatprep.subr.msk.bf16.mxu0 %vm212_vm0, %v3704_v4  ;;  %v214_v13 = vsel %vm212_vm0, %v3703_v6, 0  ;;  %v3710_v15 = vcombine.high %v91_v11, %v103_v12  ;;  %3729 = vmatprep.subr.msk.bf16.mxu1 %vm212_vm0, %v3706_v8  ;;  %v220_v19 = vsel %vm212_vm0, %v3705_v9, 0  ;;  %v4314_v20 = vld [vmem:[#allocation2] sm:$0x1]  ;;  %v3709_v21 = vcombine.low %v91_v11, %v103_v12  ;;  %v105_v23 = vld [vmem:[#allocation8 + $0x88] sm:$0x11] }
  0x43   :  { %300 = vmatpush1.bf16.msra.mxu0 %v214_v13  ;;  %341 = vmatpush1.bf16.msra.mxu1 %v220_v19  ;;  %v226_v24 = vsel %vm212_vm0, %v3707_v16, 0  ;;  %v3712_v26 = vcombine.high %v92_v17, %v104_v18  ;;  %v3714_v27 = vcombine.high %v93_v22, %v105_v23  ;;  %v3711_v28 = vcombine.low %v92_v17, %v104_v18  ;;  %v94_v30 = vld [vmem:[#allocation8 + $0x30] sm:$0xff]  ;;  %v95_v32 = vld [vmem:[#allocation8 + $0x38] sm:$0xff]  ;;  %v96_v40 = vld [vmem:[#allocation8 + $0x40] sm:$0xff]  ;;  %s3678_s4 = sshll.u32 %s4250_s2, 4  ;;  %s3679_s4 = int_to_ptr.vmem [resolvable:$true] %s3678_s4 }
  0x44   :  { %3731 = vmatprep.subr.msk.bf16.mxu0 %vm212_vm0, %v3708_v14  ;;  %3733 = vmatprep.subr.msk.bf16.mxu1 %vm212_vm0, %v3710_v15  ;;  %v232_v25 = vsel %vm212_vm0, %v3709_v21, 0  ;;  %v3713_v29 = vcombine.low %v93_v22, %v105_v23  ;;  %v106_v31 = vld [vmem:[#allocation8 + $0x90] sm:$0x11]  ;;  %v107_v33 = vld [vmem:[#allocation8 + $0x98] sm:$0x11]  ;;  %v97_v42 = vld [vmem:[#allocation8 + $0x48] sm:$0xff]  ;;  %p4194_p12 = scmp.lt.s32.totalorder %s3679_s4, %s3679_s4 }
  0x45   :  { %v238_v34 = vsel %vm212_vm0, %v3711_v28, 0  ;;  %v3716_v36 = vcombine.high %v94_v30, %v106_v31  ;;  %v3718_v37 = vcombine.high %v95_v32, %v107_v33  ;;  %v3715_v38 = vcombine.low %v94_v30, %v106_v31  ;;  %v108_v41 = vld [vmem:[#allocation8 + $0xa0] sm:$0x11]  ;;  %v109_v43 = vld [vmem:[#allocation8 + $0xa8] sm:$0x11]  ;;  %v98_v50 = vld [vmem:[#allocation8 + $0x50] sm:$0xff] }
  0x46   :  { %3728 = vmatmul.mubr.msk.bf16.vlgmr.msra.gmra.mxu0 %vm208_vm1, %v4314_v20  ;;  %3730 = vmatmul.mubr.msk.bf16.vlgmr.msra.gmra.mxu1 %vm208_vm1, %v4314_v20  ;;  %v244_v35 = vsel %vm212_vm0, %v3713_v29, 0  ;;  %v3717_v39 = vcombine.low %v95_v32, %v107_v33  ;;  %v3720_v46 = vcombine.high %v96_v40, %v108_v41  ;;  %v3722_v47 = vcombine.high %v97_v42, %v109_v43  ;;  %v110_v51 = vld [vmem:[#allocation8 + $0xb0] sm:$0x11]  ;;  %v99_v52 = vld [vmem:[#allocation8 + $0x58] sm:$0xff]  ;;  %v1096_v63 = vld [vmem:[#allocation10 + $0x540] sm:$0xff]  ;;  %s4189_s22 = scalar_lea.vmem %s3679_s4, 768 }
  0x47   :  { %382 = vmatpush1.bf16.msra.mxu0 %v226_v24  ;;  %423 = vmatpush1.bf16.msra.mxu1 %v232_v25  ;;  %v250_v44 = vsel %vm212_vm0, %v3715_v38, 0  ;;  %v3719_v48 = vcombine.low %v96_v40, %v108_v41  ;;  %v3721_v49 = vcombine.low %v97_v42, %v109_v43  ;;  %v111_v53 = vld [vmem:[#allocation8 + $0xb8] sm:$0x11]  ;;  %v3724_v56 = vcombine.high %v98_v50, %v110_v51  ;;  %v1108_v1 = vld [vmem:[#allocation10 + $0x5a0] sm:$0xff]  ;;  %v1097_v2 = vld [vmem:[#allocation10 + $0x548] sm:$0xff]  ;;  %p4190_p11 = scmp.ne.s32.totalorder %s3679_s4, %s4189_s22  ;;  %p4195_p13 = scmp.lt.s32.totalorder %s4189_s22, %s4189_s22 }
  0x48   :  { %399 = vmatprep.mubr.bf16.mxu0 %v4246_v0  ;;  %440 = vmatprep.mubr.bf16.mxu1 %v4246_v0  ;;  %v256_v45 = vsel %vm212_vm0, %v3717_v39, 0  ;;  %v3726_v57 = vcombine.high %v99_v52, %v111_v53  ;;  %v3723_v58 = vcombine.low %v98_v50, %v110_v51  ;;  %v3725_v59 = vcombine.low %v99_v52, %v111_v53  ;;  %v1109_v3 = vld [vmem:[#allocation10 + $0x5a8] sm:$0xff]  ;;  %v4364_v10 = vld.sshfl [vmem:[#allocation5] sm:$0x11 pattern:$0x75316420] }
  0x49   :  { %3735 = vmatprep.subr.msk.bf16.mxu0 %vm212_vm0, %v3712_v26  ;;  %3737 = vmatprep.subr.msk.bf16.mxu1 %vm212_vm0, %v3714_v27  ;;  %v262_v54 = vsel %vm212_vm0, %v3719_v48, 0  ;;  %v268_v55 = vsel %vm212_vm0, %v3721_v49, 0  ;;  %v4247_v61 = vmov 1966171168   ;;  %v3921_v6 = vcombine.high %v1096_v63, %v1108_v1  ;;  %v1072_v11 = vld [vmem:[#allocation10 + $0x480] sm:$0xff]  ;;  %v1073_v15 = vld [vmem:[#allocation10 + $0x488] sm:$0xff]  ;;  %p4196_p0 = por %p4195_p13, %p4194_p12 }
  0x4a   :  { %v1250_v62 = vunpack.c.l.s4 %v4247_v61  ;;  %v274_v4 = vsel %vm212_vm0, %v3723_v58, 0  ;;  %v280_v5 = vsel %vm212_vm0, %v3725_v59, 0  ;;  %v3923_v9 = vcombine.high %v1097_v2, %v1109_v3  ;;  %v1084_v12 = vld [vmem:[#allocation10 + $0x4e0] sm:$0xff]  ;;  %v1085_v16 = vld [vmem:[#allocation10 + $0x4e8] sm:$0xff] }
  0x4b   :  { %v1248_v13 = vcombine.high %v4364_v10, %v4364_v10  ;;  %v3920_v17 = vcombine.low %v1096_v63, %v1108_v1  ;;  %v3922_v18 = vcombine.low %v1097_v2, %v1109_v3  ;;  %v3897_v19 = vcombine.high %v1072_v11, %v1084_v12  ;;  %v1048_v22 = vld [vmem:[#allocation10 + $0x3c0] sm:$0xff]  ;;  %v1049_v24 = vld [vmem:[#allocation10 + $0x3c8] sm:$0xff]  ;;  %p4197_p1 = pnand %p4196_p0, %p4190_p11 }
  0x4c   :  { %v1251_v8 = vunpack.c.0.s8 %v1250_v62  ;;  %v3899_v21 = vcombine.high %v1073_v15, %v1085_v16  ;;  %v1060_v23 = vld [vmem:[#allocation10 + $0x420] sm:$0xff]  ;;  %v1061_v25 = vld [vmem:[#allocation10 + $0x428] sm:$0xff]  ;;  %vm2800_vm2 = vcmask 646144   ;;  %v3896_v26 = vcombine.low %v1072_v11, %v1084_v12 }
  0x4d   :  { %v3898_v27 = vcombine.low %v1073_v15, %v1085_v16  ;;  %v3873_v28 = vcombine.high %v1048_v22, %v1060_v23  ;;  %v3875_v29 = vcombine.high %v1049_v24, %v1061_v25  ;;  %v1024_v30 = vld [vmem:[#allocation10 + $0x300] sm:$0xff]  ;;  %v1025_v32 = vld [vmem:[#allocation10 + $0x308] sm:$0xff]  ;;  %vm2804_vm3 = vcmask 1046528  }
  0x4e   :  { %3732 = vmatmul.mubr.msk.bf16.vlgmr.msra.gmra.mxu0 %vm208_vm1, %v4314_v20  ;;  %3734 = vmatmul.mubr.msk.bf16.vlgmr.msra.gmra.mxu1 %vm208_vm1, %v4314_v20  ;;  %v4373_v14 = vsub.s32 %v1251_v8, %v4360_v7  ;;  %v1036_v31 = vld [vmem:[#allocation10 + $0x360] sm:$0xff]  ;;  %v1037_v33 = vld [vmem:[#allocation10 + $0x368] sm:$0xff]  ;;  %vm2805_vm4 = vcmask 1047552  }
  0x4f   :  { %464 = vmatpush1.bf16.msra.mxu0 %v238_v34  ;;  %505 = vmatpush1.bf16.msra.mxu1 %v244_v35  ;;  %v3874_v34 = vcombine.low %v1049_v24, %v1061_v25  ;;  %v3849_v35 = vcombine.high %v1024_v30, %v1036_v31  ;;  %v1012_v38 = vld [vmem:[#allocation10 + $0x2a0] sm:$0xff]  ;;  %v1001_v39 = vld [vmem:[#allocation10 + $0x248] sm:$0xff]  ;;  %v3848_v41 = vcombine.low %v1024_v30, %v1036_v31 }
  0x50   :  { %481 = vmatprep.mubr.bf16.mxu0 %v4246_v0  ;;  %522 = vmatprep.mubr.bf16.mxu1 %v4246_v0  ;;  %v1013_v40 = vld [vmem:[#allocation10 + $0x2a8] sm:$0xff]  ;;  %v3850_v42 = vcombine.low %v1025_v32, %v1037_v33  ;;  %v952_v53 = vld [vmem:[#allocation10 + $0xc0] sm:$0xff] }
  0x51   :  { %3739 = vmatprep.subr.msk.bf16.mxu0 %vm212_vm0, %v3716_v36  ;;  %3741 = vmatprep.subr.msk.bf16.mxu1 %vm212_vm0, %v3718_v37  ;;  %v3851_v36 = vcombine.high %v1025_v32, %v1037_v33  ;;  %v1000_v37 = vld [vmem:[#allocation10 + $0x240] sm:$0xff]  ;;  %v989_v48 = vld [vmem:[#allocation10 + $0x1e8] sm:$0xff]  ;;  %v3826_v50 = vcombine.low %v1001_v39, %v1013_v40 }
  0x52   :  { %v3825_v43 = vcombine.high %v1000_v37, %v1012_v38  ;;  %v3824_v49 = vcombine.low %v1000_v37, %v1012_v38  ;;  %v928_v60 = vld [vmem:[#allocation10] sm:$0xff]  ;;  %v929_v63 = vld [vmem:[#allocation10 + $0x8] sm:$0xff] }
  0x53   :  { %v940_v61 = vld [vmem:[#allocation10 + $0x60] sm:$0xff]  ;;  %v941_v3 = vld [vmem:[#allocation10 + $0x68] sm:$0xff] }
  0x54   :  { %v1216_v1 = vld [vmem:[#allocation10 + $0x900] sm:$0xff]  ;;  %v1229_v8 = vld [vmem:[#allocation10 + $0x968] sm:$0xff]  ;;  %v3753_v12 = vcombine.high %v928_v60, %v940_v61  ;;  %v3755_v15 = vcombine.high %v929_v63, %v941_v3 }
  0x55   :  { %v1228_v2 = vld [vmem:[#allocation10 + $0x960] sm:$0xff] }
  0x56   :  { %3736 = vmatmul.mubr.msk.bf16.vlgmr.msra.gmra.mxu0 %vm208_vm1, %v4314_v20  ;;  %3738 = vmatmul.mubr.msk.bf16.vlgmr.msra.gmra.mxu1 %vm208_vm1, %v4314_v20  ;;  %v1192_v25 = vld [vmem:[#allocation10 + $0x840] sm:$0xff] }
  0x57   :  { %546 = vmatpush1.bf16.msra.mxu0 %v250_v44  ;;  %587 = vmatpush1.bf16.msra.mxu1 %v256_v45  ;;  %v3827_v44 = vcombine.high %v1001_v39, %v1013_v40  ;;  %v976_v45 = vld [vmem:[#allocation10 + $0x180] sm:$0xff] }
  0x58   :  { %563 = vmatprep.mubr.bf16.mxu0 %v4246_v0  ;;  %604 = vmatprep.mubr.bf16.mxu1 %v4246_v0  ;;  %v1168_v33 = vld [vmem:[#allocation10 + $0x780] sm:$0xff] }
  0x59   :  { %3743 = vmatprep.subr.msk.bf16.mxu0 %vm212_vm0, %v3720_v46  ;;  %3745 = vmatprep.subr.msk.bf16.mxu1 %vm212_vm0, %v3722_v47  ;;  %v988_v46 = vld [vmem:[#allocation10 + $0x1e0] sm:$0xff]  ;;  %v977_v47 = vld [vmem:[#allocation10 + $0x188] sm:$0xff] }
  0x5a   :  { %v3801_v51 = vcombine.high %v976_v45, %v988_v46  ;;  %v3803_v52 = vcombine.high %v977_v47, %v989_v48  ;;  %v3802_v58 = vcombine.low %v977_v47, %v989_v48  ;;  %v1144_v40 = vld [vmem:[#allocation10 + $0x6c0] sm:$0xff] }
  0x5b   :  { %v1120_v48 = vld [vmem:[#allocation10 + $0x600] sm:$0xff] }
  0x5e   :  { %3740 = vmatmul.mubr.msk.bf16.vlgmr.msra.gmra.mxu0 %vm208_vm1, %v4314_v20  ;;  %3742 = vmatmul.mubr.msk.bf16.vlgmr.msra.gmra.mxu1 %vm208_vm1, %v4314_v20 }
  0x5f   :  { %628 = vmatpush1.bf16.msra.mxu0 %v262_v54  ;;  %669 = vmatpush1.bf16.msra.mxu1 %v268_v55  ;;  %v964_v54 = vld [vmem:[#allocation10 + $0x120] sm:$0xff]  ;;  %v953_v55 = vld [vmem:[#allocation10 + $0xc8] sm:$0xff] }
  0x60   :  { %645 = vmatprep.mubr.bf16.mxu0 %v4246_v0  ;;  %686 = vmatprep.mubr.bf16.mxu1 %v4246_v0  ;;  %v3777_v59 = vcombine.high %v952_v53, %v964_v54 }
  0x61   :  { %3747 = vmatprep.subr.msk.bf16.mxu0 %vm212_vm0, %v3724_v56  ;;  %3749 = vmatprep.subr.msk.bf16.mxu1 %vm212_vm0, %v3726_v57  ;;  %v965_v56 = vld [vmem:[#allocation10 + $0x128] sm:$0xff]  ;;  %v3800_v57 = vcombine.low %v976_v45, %v988_v46 }
  0x62   :  { %v3779_v62 = vcombine.high %v953_v55, %v965_v56  ;;  %v3778_v11 = vcombine.low %v953_v55, %v965_v56  ;;  %v1098_v56 = vld [vmem:[#allocation10 + $0x550] sm:$0xff] }
  0x66   :  { %3744 = vmatmul.mubr.msk.bf16.vlgmr.msra.gmra.mxu0 %vm208_vm1, %v4314_v20  ;;  %3746 = vmatmul.mubr.msk.bf16.vlgmr.msra.gmra.mxu1 %vm208_vm1, %v4314_v20 }
  0x67   :  { %710 = vmatpush1.bf16.msra.mxu0 %v274_v4  ;;  %751 = vmatpush1.bf16.msra.mxu1 %v280_v5  ;;  %v4248_v4 = vmov 65535  }
  0x68   :  { %727 = vmatprep.mubr.bf16.mxu0 %v4246_v0  ;;  %768 = vmatprep.mubr.bf16.mxu1 %v4246_v0  ;;  %v4376_v0 = vrot.slane %v1248_v13, %v4373_v14  ;;  %v2806_v5 = vsel %vm2804_vm3, 4294967295, %v4248_v4  ;;  %v4041_v13 = vcombine.high %v1216_v1, %v1228_v2  ;;  %v1075_v4 = vld [vmem:[#allocation10 + $0x498] sm:$0xff] }
  0x69   :  { %2880 = vmatprep.subr.bf16.mxu0 %v3921_v6  ;;  %2921 = vmatprep.subr.bf16.mxu1 %v3923_v9  ;;  %v1217_v6 = vld [vmem:[#allocation10 + $0x908] sm:$0xff]  ;;  %v3776_v9 = vcombine.low %v952_v53, %v964_v54  ;;  %v4386_v16 = vsel %vm2805_vm4, %v2806_v5, 0  ;;  %v1087_v5 = vld [vmem:[#allocation10 + $0x4f8] sm:$0xff] }
  0x6e   :  { %3748 = vmatmul.mubr.msk.bf16.vlgmr.msra.gmra.mxu0 %vm208_vm1, %v4314_v20  ;;  %3750 = vmatmul.mubr.msk.bf16.vlgmr.msra.gmra.mxu1 %vm208_vm1, %v4314_v20  ;;  %v3872_v20 = vcombine.low %v1048_v22, %v1060_v23  ;;  %v2812_v22 = vand.u32 %v4041_v13, %v4386_v16  ;;  %v4042_v23 = vcombine.low %v1217_v6, %v1229_v8  ;;  %v1062_v13 = vld [vmem:[#allocation10 + $0x430] sm:$0xff] }
  0x6f   :  { %2881 = vmatpush1.bf16.msra.mxu0 %v3920_v17  ;;  %2922 = vmatpush1.bf16.msra.mxu1 %v3922_v18  ;;  %v4043_v17 = vcombine.high %v1217_v6, %v1229_v8  ;;  %v3752_v18 = vcombine.low %v928_v60, %v940_v61 }
  0x70   :  { %2882 = vmatprep.subr.bf16.mxu0 %v3897_v19  ;;  %2923 = vmatprep.subr.bf16.mxu1 %v3899_v21  ;;  %v4040_v19 = vcombine.low %v1216_v1, %v1228_v2  ;;  %v3754_v21 = vcombine.low %v929_v63, %v941_v3  ;;  %v2815_v30 = vand.u32 %v4042_v23, %v4386_v16  ;;  %v1074_v1 = vld [vmem:[#allocation10 + $0x490] sm:$0xff]  ;;  %v1027_v23 = vld [vmem:[#allocation10 + $0x318] sm:$0xff] }
  0x71   :  { %4064 = vmatprep.mubr.msk.bf16.mxu0 %vm2800_vm2, %v4376_v0  ;;  %4065 = vmatprep.mubr.msk.bf16.mxu1 %vm2800_vm2, %v4376_v0  ;;  %v2818_v24 = vand.u32 %v4043_v17, %v4386_v16  ;;  %v1086_v2 = vld [vmem:[#allocation10 + $0x4f0] sm:$0xff]  ;;  %v4394_v3 = vrot.slane %v4364_v10, %v4373_v14  ;;  %v1063_v17 = vld [vmem:[#allocation10 + $0x438] sm:$0xff]  ;;  %v3902_v14 = vcombine.low %v1075_v4, %v1087_v5 }
  0x72   :  { %v3900_v10 = vcombine.low %v1074_v1, %v1086_v2 }
  0x73   :  { %2883 = vmatpush1.bf16.msra.mxu0 %v3896_v26  ;;  %2924 = vmatpush1.bf16.msra.mxu1 %v3898_v27  ;;  %v1204_v26 = vld [vmem:[#allocation10 + $0x8a0] sm:$0xff]  ;;  %v1193_v27 = vld [vmem:[#allocation10 + $0x848] sm:$0xff] }
  0x74   :  { %2884 = vmatprep.subr.bf16.mxu0 %v3873_v28  ;;  %2925 = vmatprep.subr.bf16.mxu1 %v3875_v29  ;;  %v1205_v28 = vld [vmem:[#allocation10 + $0x8a8] sm:$0xff]  ;;  %v2809_v29 = vand.u32 %v4040_v19, %v4386_v16  ;;  %v4017_v31 = vcombine.high %v1192_v25, %v1204_v26 }
  0x75   :  { %v4019_v32 = vcombine.high %v1193_v27, %v1205_v28  ;;  %v4018_v37 = vcombine.low %v1193_v27, %v1205_v28 }
  0x77   :  { %2885 = vmatpush1.bf16.msra.mxu0 %v3872_v20  ;;  %2926 = vmatpush1.bf16.msra.mxu1 %v3874_v34  ;;  %v1180_v20 = vld [vmem:[#allocation10 + $0x7e0] sm:$0xff]  ;;  %v1169_v34 = vld [vmem:[#allocation10 + $0x788] sm:$0xff] }
  0x78   :  { %2886 = vmatprep.subr.bf16.mxu0 %v3849_v35  ;;  %2927 = vmatprep.subr.bf16.mxu1 %v3851_v36  ;;  %v1181_v35 = vld [vmem:[#allocation10 + $0x7e8] sm:$0xff]  ;;  %v4016_v36 = vcombine.low %v1192_v25, %v1204_v26  ;;  %v3993_v38 = vcombine.high %v1168_v33, %v1180_v20 }
  0x79   :  { %v3995_v39 = vcombine.high %v1169_v34, %v1181_v35  ;;  %v3994_v45 = vcombine.low %v1169_v34, %v1181_v35 }
  0x7b   :  { %2887 = vmatpush1.bf16.msra.mxu0 %v3848_v41  ;;  %2928 = vmatpush1.bf16.msra.mxu1 %v3850_v42  ;;  %v1156_v41 = vld [vmem:[#allocation10 + $0x720] sm:$0xff]  ;;  %v1145_v42 = vld [vmem:[#allocation10 + $0x6c8] sm:$0xff] }
  0x7c   :  { %2888 = vmatprep.subr.bf16.mxu0 %v3825_v43  ;;  %2929 = vmatprep.subr.bf16.mxu1 %v3827_v44  ;;  %v1157_v43 = vld [vmem:[#allocation10 + $0x728] sm:$0xff]  ;;  %v3992_v44 = vcombine.low %v1168_v33, %v1180_v20  ;;  %v3969_v46 = vcombine.high %v1144_v40, %v1156_v41 }
  0x7d   :  { %v3971_v47 = vcombine.high %v1145_v42, %v1157_v43  ;;  %v3970_v53 = vcombine.low %v1145_v42, %v1157_v43 }
  0x7f   :  { %2889 = vmatpush1.bf16.msra.mxu0 %v3824_v49  ;;  %2930 = vmatpush1.bf16.msra.mxu1 %v3826_v50  ;;  %v1132_v49 = vld [vmem:[#allocation10 + $0x660] sm:$0xff]  ;;  %v1121_v50 = vld [vmem:[#allocation10 + $0x608] sm:$0xff] }
  0x80   :  { %2890 = vmatprep.subr.bf16.mxu0 %v3801_v51  ;;  %2931 = vmatprep.subr.bf16.mxu1 %v3803_v52  ;;  %v1133_v51 = vld [vmem:[#allocation10 + $0x668] sm:$0xff]  ;;  %v3968_v52 = vcombine.low %v1144_v40, %v1156_v41  ;;  %v3945_v54 = vcombine.high %v1120_v48, %v1132_v49  ;;  %v3944_v60 = vcombine.low %v1120_v48, %v1132_v49 }
  0x81   :  { %v3947_v55 = vcombine.high %v1121_v50, %v1133_v51  ;;  %v3946_v61 = vcombine.low %v1121_v50, %v1133_v51  ;;  %v930_v51 = vld [vmem:[#allocation10 + $0x10] sm:$0xff] }
  0x83   :  { %2891 = vmatpush1.bf16.msra.mxu0 %v3800_v57  ;;  %2932 = vmatpush1.bf16.msra.mxu1 %v3802_v58  ;;  %v1110_v57 = vld [vmem:[#allocation10 + $0x5b0] sm:$0xff]  ;;  %v1099_v58 = vld [vmem:[#allocation10 + $0x558] sm:$0xff] }
  0x84   :  { %2892 = vmatprep.subr.bf16.mxu0 %v3777_v59  ;;  %2933 = vmatprep.subr.bf16.mxu1 %v3779_v62  ;;  %v1111_v59 = vld [vmem:[#allocation10 + $0x5b8] sm:$0xff]  ;;  %v3925_v62 = vcombine.high %v1098_v56, %v1110_v57  ;;  %v3924_v6 = vcombine.low %v1098_v56, %v1110_v57  ;;  %v1230_v56 = vld [vmem:[#allocation10 + $0x970] sm:$0xff] }
  0x85   :  { %v3927_v63 = vcombine.high %v1099_v58, %v1111_v59  ;;  %v3926_v8 = vcombine.low %v1099_v58, %v1111_v59  ;;  %v943_v57 = vld [vmem:[#allocation10 + $0x78] sm:$0xff] }
  0x86   :  { %v1219_v58 = vld [vmem:[#allocation10 + $0x918] sm:$0xff] }
  0x87   :  { %2893 = vmatpush1.bf16.msra.mxu0 %v3776_v9  ;;  %2934 = vmatpush1.bf16.msra.mxu1 %v3778_v11  ;;  %v3901_v9 = vcombine.high %v1074_v1, %v1086_v2  ;;  %v3903_v11 = vcombine.high %v1075_v4, %v1087_v5  ;;  %v1231_v59 = vld [vmem:[#allocation10 + $0x978] sm:$0xff] }
  0x88   :  { %2894 = vmatprep.subr.bf16.mxu0 %v3753_v12  ;;  %2935 = vmatprep.subr.bf16.mxu1 %v3755_v15  ;;  %v1050_v12 = vld [vmem:[#allocation10 + $0x3d0] sm:$0xff]  ;;  %v1051_v15 = vld [vmem:[#allocation10 + $0x3d8] sm:$0xff]  ;;  %v4047_v2 = vcombine.high %v1219_v58, %v1231_v59 }
  0x89   :  { %v3879_v19 = vcombine.high %v1051_v15, %v1063_v17  ;;  %v3876_v25 = vcombine.low %v1050_v12, %v1062_v13  ;;  %v3878_v26 = vcombine.low %v1051_v15, %v1063_v17  ;;  %v1195_v15 = vld [vmem:[#allocation10 + $0x858] sm:$0xff] }
  0x8a   :  { %v1207_v17 = vld [vmem:[#allocation10 + $0x8b8] sm:$0xff] }
  0x8b   :  { %2895 = vmatpush1.bf16.msra.mxu0 %v3752_v18  ;;  %2936 = vmatpush1.bf16.msra.mxu1 %v3754_v21  ;;  %v3877_v18 = vcombine.high %v1050_v12, %v1062_v13  ;;  %v1026_v21 = vld [vmem:[#allocation10 + $0x310] sm:$0xff] }
  0x8c   :  { %2902 = vmatprep.subr.bf16.mxu0 %v2812_v22  ;;  %2943 = vmatprep.subr.bf16.mxu1 %v2818_v24  ;;  %v1038_v22 = vld [vmem:[#allocation10 + $0x370] sm:$0xff]  ;;  %v1039_v24 = vld [vmem:[#allocation10 + $0x378] sm:$0xff] }
  0x8d   :  { %v3853_v27 = vcombine.high %v1026_v21, %v1038_v22  ;;  %v3855_v28 = vcombine.high %v1027_v23, %v1039_v24  ;;  %v3852_v33 = vcombine.low %v1026_v21, %v1038_v22  ;;  %v3854_v20 = vcombine.low %v1027_v23, %v1039_v24  ;;  %v1194_v12 = vld [vmem:[#allocation10 + $0x850] sm:$0xff]  ;;  %v1171_v23 = vld [vmem:[#allocation10 + $0x798] sm:$0xff] }
  0x8e   :  { %v1206_v13 = vld [vmem:[#allocation10 + $0x8b0] sm:$0xff]  ;;  %v1183_v24 = vld [vmem:[#allocation10 + $0x7f8] sm:$0xff] }
  0x8f   :  { %2903 = vmatpush2.bf16.msra.mxu0 %v2809_v29  ;;  %2944 = vmatpush2.bf16.msra.mxu1 %v2815_v30  ;;  %v1002_v29 = vld [vmem:[#allocation10 + $0x250] sm:$0xff] }
  0x90   :  { %2904 = vmatprep.subr.bf16.mxu0 %v4017_v31  ;;  %2945 = vmatprep.subr.bf16.mxu1 %v4019_v32  ;;  %v1014_v30 = vld [vmem:[#allocation10 + $0x2b0] sm:$0xff]  ;;  %v1003_v31 = vld [vmem:[#allocation10 + $0x258] sm:$0xff] }
  0x91   :  { %v1015_v32 = vld [vmem:[#allocation10 + $0x2b8] sm:$0xff]  ;;  %v3829_v34 = vcombine.high %v1002_v29, %v1014_v30  ;;  %v3828_v40 = vcombine.low %v1002_v29, %v1014_v30  ;;  %v1170_v21 = vld [vmem:[#allocation10 + $0x790] sm:$0xff] }
  0x92   :  { %v3831_v35 = vcombine.high %v1003_v31, %v1015_v32  ;;  %v3830_v41 = vcombine.low %v1003_v31, %v1015_v32  ;;  %v1182_v22 = vld [vmem:[#allocation10 + $0x7f0] sm:$0xff]  ;;  %v1147_v31 = vld [vmem:[#allocation10 + $0x6d8] sm:$0xff] }
  0x93   :  { %2905 = vmatpush2.bf16.msra.mxu0 %v4016_v36  ;;  %2946 = vmatpush2.bf16.msra.mxu1 %v4018_v37  ;;  %v978_v36 = vld [vmem:[#allocation10 + $0x190] sm:$0xff]  ;;  %v1159_v32 = vld [vmem:[#allocation10 + $0x738] sm:$0xff] }
  0x94   :  { %2906 = vmatprep.subr.bf16.mxu0 %v3993_v38  ;;  %2947 = vmatprep.subr.bf16.mxu1 %v3995_v39  ;;  %v990_v37 = vld [vmem:[#allocation10 + $0x1f0] sm:$0xff]  ;;  %v979_v38 = vld [vmem:[#allocation10 + $0x198] sm:$0xff] }
  0x95   :  { %v991_v39 = vld [vmem:[#allocation10 + $0x1f8] sm:$0xff]  ;;  %v3805_v42 = vcombine.high %v978_v36, %v990_v37  ;;  %v3804_v48 = vcombine.low %v978_v36, %v990_v37  ;;  %v1146_v29 = vld [vmem:[#allocation10 + $0x6d0] sm:$0xff] }
  0x96   :  { %v3807_v43 = vcombine.high %v979_v38, %v991_v39  ;;  %v3806_v49 = vcombine.low %v979_v38, %v991_v39  ;;  %v1158_v30 = vld [vmem:[#allocation10 + $0x730] sm:$0xff]  ;;  %v1123_v38 = vld [vmem:[#allocation10 + $0x618] sm:$0xff] }
  0x97   :  { %2907 = vmatpush2.bf16.msra.mxu0 %v3992_v44  ;;  %2948 = vmatpush2.bf16.msra.mxu1 %v3994_v45  ;;  %v954_v44 = vld [vmem:[#allocation10 + $0xd0] sm:$0xff]  ;;  %v1135_v39 = vld [vmem:[#allocation10 + $0x678] sm:$0xff] }
  0x98   :  { %2908 = vmatprep.subr.bf16.mxu0 %v3969_v46  ;;  %2949 = vmatprep.subr.bf16.mxu1 %v3971_v47  ;;  %v966_v45 = vld [vmem:[#allocation10 + $0x130] sm:$0xff]  ;;  %v955_v46 = vld [vmem:[#allocation10 + $0xd8] sm:$0xff] }
  0x99   :  { %v967_v47 = vld [vmem:[#allocation10 + $0x138] sm:$0xff]  ;;  %v3781_v50 = vcombine.high %v954_v44, %v966_v45  ;;  %v1122_v36 = vld [vmem:[#allocation10 + $0x610] sm:$0xff] }
  0x9a   :  { %v1134_v37 = vld [vmem:[#allocation10 + $0x670] sm:$0xff] }
  0x9b   :  { %2909 = vmatpush2.bf16.msra.mxu0 %v3968_v52  ;;  %2950 = vmatpush2.bf16.msra.mxu1 %v3970_v53  ;;  %v942_v52 = vld [vmem:[#allocation10 + $0x70] sm:$0xff]  ;;  %v3783_v53 = vcombine.high %v955_v46, %v967_v47 }
  0x9c   :  { %2910 = vmatprep.subr.bf16.mxu0 %v3945_v54  ;;  %2951 = vmatprep.subr.bf16.mxu1 %v3947_v55  ;;  %v931_v54 = vld [vmem:[#allocation10 + $0x18] sm:$0xff]  ;;  %v1218_v55 = vld [vmem:[#allocation10 + $0x910] sm:$0xff]  ;;  %v3756_v4 = vcombine.low %v930_v51, %v942_v52 }
  0x9d   :  { %v3759_v1 = vcombine.high %v931_v54, %v943_v57  ;;  %v4044_v5 = vcombine.low %v1218_v55, %v1230_v56 }
  0x9f   :  { %2911 = vmatpush2.bf16.msra.mxu0 %v3944_v60  ;;  %2952 = vmatpush2.bf16.msra.mxu1 %v3946_v61  ;;  %v3780_v60 = vcombine.low %v954_v44, %v966_v45  ;;  %v3782_v61 = vcombine.low %v955_v46, %v967_v47  ;;  %v1100_v44 = vld [vmem:[#allocation10 + $0x560] sm:$0xff]  ;;  %v1101_v46 = vld [vmem:[#allocation10 + $0x568] sm:$0xff] }
  0xa0   :  { %2962 = vmatprep.subr.bf16.mxu0 %v3925_v62  ;;  %3003 = vmatprep.subr.bf16.mxu1 %v3927_v63  ;;  %v3757_v62 = vcombine.high %v930_v51, %v942_v52  ;;  %v4045_v63 = vcombine.high %v1218_v55, %v1230_v56  ;;  %v1112_v45 = vld [vmem:[#allocation10 + $0x5c0] sm:$0xff]  ;;  %v1113_v47 = vld [vmem:[#allocation10 + $0x5c8] sm:$0xff] }
  0xa1   :  { %v3931_v51 = vcombine.high %v1101_v46, %v1113_v47  ;;  %v1076_v52 = vld [vmem:[#allocation10 + $0x4a0] sm:$0xff]  ;;  %v1089_v55 = vld [vmem:[#allocation10 + $0x508] sm:$0xff]  ;;  %v3928_v56 = vcombine.low %v1100_v44, %v1112_v45 }
  0xa2   :  { %2913 = vmatmul.mubr.bf16.vlgmr.msra.gmra.mxu0 %v4394_v3  ;;  %2954 = vmatmul.mubr.bf16.vlgmr.msra.gmra.mxu1 %v4394_v3 }
  0xa3   :  { %2963 = vmatpush1.bf16.msra.mxu0 %v3924_v6  ;;  %3004 = vmatpush1.bf16.msra.mxu1 %v3926_v8  ;;  %v3758_v6 = vcombine.low %v931_v54, %v943_v57  ;;  %v2824_v8 = vand.u32 %v4045_v63, %v4386_v16  ;;  %v1077_v54 = vld [vmem:[#allocation10 + $0x4a8] sm:$0xff]  ;;  %v3930_v57 = vcombine.low %v1101_v46, %v1113_v47 }
  0xa4   :  { %2964 = vmatprep.subr.bf16.mxu0 %v3901_v9  ;;  %3005 = vmatprep.subr.bf16.mxu1 %v3903_v11  ;;  %v4046_v9 = vcombine.low %v1219_v58, %v1231_v59  ;;  %v2830_v11 = vand.u32 %v4047_v2, %v4386_v16  ;;  %v3907_v59 = vcombine.high %v1077_v54, %v1089_v55  ;;  %v1065_v63 = vld [vmem:[#allocation10 + $0x448] sm:$0xff] }
  0xa5   :  { %4066 = vmatprep.mubr.msk.bf16.mxu0 %vm2800_vm2, %v4376_v0  ;;  %4067 = vmatprep.mubr.msk.bf16.mxu1 %vm2800_vm2, %v4376_v0  ;;  %v3906_v2 = vcombine.low %v1077_v54, %v1089_v55  ;;  %v1221_v46 = vld [vmem:[#allocation10 + $0x928] sm:$0xff] }
  0xa6   :  { %v1233_v47 = vld [vmem:[#allocation10 + $0x988] sm:$0xff] }
  0xa7   :  { %2965 = vmatpush1.bf16.msra.mxu0 %v3900_v10  ;;  %3006 = vmatpush1.bf16.msra.mxu1 %v3902_v14  ;;  %v2821_v10 = vand.u32 %v4044_v5, %v4386_v16  ;;  %v2827_v14 = vand.u32 %v4046_v9, %v4386_v16  ;;  %v1029_v9 = vld [vmem:[#allocation10 + $0x328] sm:$0xff] }
  0xa8   :  { %2966 = vmatprep.subr.bf16.mxu0 %v3877_v18  ;;  %3007 = vmatprep.subr.bf16.mxu1 %v3879_v19  ;;  %v4021_v18 = vcombine.high %v1194_v12, %v1206_v13  ;;  %v4023_v19 = vcombine.high %v1195_v15, %v1207_v17 }
  0xab   :  { %2967 = vmatpush1.bf16.msra.mxu0 %v3876_v25  ;;  %3008 = vmatpush1.bf16.msra.mxu1 %v3878_v26  ;;  %v4020_v25 = vcombine.low %v1194_v12, %v1206_v13  ;;  %v4022_v26 = vcombine.low %v1195_v15, %v1207_v17 }
  0xac   :  { %2968 = vmatprep.subr.bf16.mxu0 %v3853_v27  ;;  %3009 = vmatprep.subr.bf16.mxu1 %v3855_v28  ;;  %v3997_v27 = vcombine.high %v1170_v21, %v1182_v22  ;;  %v3999_v28 = vcombine.high %v1171_v23, %v1183_v24 }
  0xaf   :  { %2969 = vmatpush1.bf16.msra.mxu0 %v3852_v33  ;;  %3010 = vmatpush1.bf16.msra.mxu1 %v3854_v20  ;;  %v3996_v33 = vcombine.low %v1170_v21, %v1182_v22  ;;  %v3998_v20 = vcombine.low %v1171_v23, %v1183_v24 }
  0xb0   :  { %2970 = vmatprep.subr.bf16.mxu0 %v3829_v34  ;;  %3011 = vmatprep.subr.bf16.mxu1 %v3831_v35  ;;  %v3973_v34 = vcombine.high %v1146_v29, %v1158_v30  ;;  %v3975_v35 = vcombine.high %v1147_v31, %v1159_v32 }
  0xb3   :  { %2971 = vmatpush1.bf16.msra.mxu0 %v3828_v40  ;;  %3012 = vmatpush1.bf16.msra.mxu1 %v3830_v41  ;;  %v3972_v40 = vcombine.low %v1146_v29, %v1158_v30  ;;  %v3974_v41 = vcombine.low %v1147_v31, %v1159_v32 }
  0xb4   :  { %2972 = vmatprep.subr.bf16.mxu0 %v3805_v42  ;;  %3013 = vmatprep.subr.bf16.mxu1 %v3807_v43  ;;  %v3949_v42 = vcombine.high %v1122_v36, %v1134_v37  ;;  %v3951_v43 = vcombine.high %v1123_v38, %v1135_v39 }
  0xb7   :  { %2973 = vmatpush1.bf16.msra.mxu0 %v3804_v48  ;;  %3014 = vmatpush1.bf16.msra.mxu1 %v3806_v49  ;;  %v3948_v48 = vcombine.low %v1122_v36, %v1134_v37  ;;  %v3950_v49 = vcombine.low %v1123_v38, %v1135_v39  ;;  %v932_v39 = vld [vmem:[#allocation10 + $0x20] sm:$0xff] }
  0xb8   :  { %2974 = vmatprep.subr.bf16.mxu0 %v3781_v50  ;;  %3015 = vmatprep.subr.bf16.mxu1 %v3783_v53  ;;  %v3929_v50 = vcombine.high %v1100_v44, %v1112_v45  ;;  %v1088_v53 = vld [vmem:[#allocation10 + $0x500] sm:$0xff]  ;;  %v945_v45 = vld [vmem:[#allocation10 + $0x88] sm:$0xff] }
  0xb9   :  { %v3905_v58 = vcombine.high %v1076_v52, %v1088_v53  ;;  %v1232_v44 = vld [vmem:[#allocation10 + $0x980] sm:$0xff] }
  0xbb   :  { %2975 = vmatpush1.bf16.msra.mxu0 %v3780_v60  ;;  %3016 = vmatpush1.bf16.msra.mxu1 %v3782_v61  ;;  %v1052_v60 = vld [vmem:[#allocation10 + $0x3e0] sm:$0xff] }
  0xbc   :  { %2976 = vmatprep.subr.bf16.mxu0 %v3757_v62  ;;  %3017 = vmatprep.subr.bf16.mxu1 %v3759_v1  ;;  %v1064_v61 = vld [vmem:[#allocation10 + $0x440] sm:$0xff]  ;;  %v1053_v62 = vld [vmem:[#allocation10 + $0x3e8] sm:$0xff]  ;;  %v3904_v1 = vcombine.low %v1076_v52, %v1088_v53  ;;  %v4051_v53 = vcombine.high %v1221_v46, %v1233_v47 }
  0xbd   :  { %v3883_v5 = vcombine.high %v1053_v62, %v1065_v63  ;;  %v3880_v12 = vcombine.low %v1052_v60, %v1064_v61  ;;  %v3882_v13 = vcombine.low %v1053_v62, %v1065_v63  ;;  %v1197_v62 = vld [vmem:[#allocation10 + $0x868] sm:$0xff] }
  0xbe   :  { %v1209_v63 = vld [vmem:[#allocation10 + $0x8c8] sm:$0xff] }
  0xbf   :  { %2977 = vmatpush1.bf16.msra.mxu0 %v3756_v4  ;;  %3018 = vmatpush1.bf16.msra.mxu1 %v3758_v6  ;;  %v3881_v4 = vcombine.high %v1052_v60, %v1064_v61  ;;  %v1028_v6 = vld [vmem:[#allocation10 + $0x320] sm:$0xff] }
  0xc0   :  { %2984 = vmatprep.subr.bf16.mxu0 %v2824_v8  ;;  %3025 = vmatprep.subr.bf16.mxu1 %v2830_v11  ;;  %v1040_v8 = vld [vmem:[#allocation10 + $0x380] sm:$0xff]  ;;  %v1041_v11 = vld [vmem:[#allocation10 + $0x388] sm:$0xff] }
  0xc1   :  { %v3857_v15 = vcombine.high %v1028_v6, %v1040_v8  ;;  %v3859_v17 = vcombine.high %v1029_v9, %v1041_v11  ;;  %v3856_v21 = vcombine.low %v1028_v6, %v1040_v8  ;;  %v3858_v22 = vcombine.low %v1029_v9, %v1041_v11  ;;  %v1196_v60 = vld [vmem:[#allocation10 + $0x860] sm:$0xff]  ;;  %v1173_v9 = vld [vmem:[#allocation10 + $0x7a8] sm:$0xff] }
  0xc2   :  { %v1208_v61 = vld [vmem:[#allocation10 + $0x8c0] sm:$0xff]  ;;  %v1185_v11 = vld [vmem:[#allocation10 + $0x808] sm:$0xff] }
  0xc3   :  { %2985 = vmatpush2.bf16.msra.mxu0 %v2821_v10  ;;  %3026 = vmatpush2.bf16.msra.mxu1 %v2827_v14  ;;  %v1004_v10 = vld [vmem:[#allocation10 + $0x260] sm:$0xff] }
  0xc4   :  { %2986 = vmatprep.subr.bf16.mxu0 %v4021_v18  ;;  %3027 = vmatprep.subr.bf16.mxu1 %v4023_v19  ;;  %v1016_v14 = vld [vmem:[#allocation10 + $0x2c0] sm:$0xff]  ;;  %v1005_v18 = vld [vmem:[#allocation10 + $0x268] sm:$0xff] }
  0xc5   :  { %v1017_v19 = vld [vmem:[#allocation10 + $0x2c8] sm:$0xff]  ;;  %v3833_v23 = vcombine.high %v1004_v10, %v1016_v14  ;;  %v3832_v29 = vcombine.low %v1004_v10, %v1016_v14  ;;  %v1172_v6 = vld [vmem:[#allocation10 + $0x7a0] sm:$0xff] }
  0xc6   :  { %v3835_v24 = vcombine.high %v1005_v18, %v1017_v19  ;;  %v3834_v30 = vcombine.low %v1005_v18, %v1017_v19  ;;  %v1184_v8 = vld [vmem:[#allocation10 + $0x800] sm:$0xff]  ;;  %v1149_v18 = vld [vmem:[#allocation10 + $0x6e8] sm:$0xff] }
  0xc7   :  { %2987 = vmatpush2.bf16.msra.mxu0 %v4020_v25  ;;  %3028 = vmatpush2.bf16.msra.mxu1 %v4022_v26  ;;  %v980_v25 = vld [vmem:[#allocation10 + $0x1a0] sm:$0xff]  ;;  %v1161_v19 = vld [vmem:[#allocation10 + $0x748] sm:$0xff] }
  0xc8   :  { %2988 = vmatprep.subr.bf16.mxu0 %v3997_v27  ;;  %3029 = vmatprep.subr.bf16.mxu1 %v3999_v28  ;;  %v992_v26 = vld [vmem:[#allocation10 + $0x200] sm:$0xff]  ;;  %v981_v27 = vld [vmem:[#allocation10 + $0x1a8] sm:$0xff] }
  0xc9   :  { %v993_v28 = vld [vmem:[#allocation10 + $0x208] sm:$0xff]  ;;  %v3809_v31 = vcombine.high %v980_v25, %v992_v26  ;;  %v3808_v36 = vcombine.low %v980_v25, %v992_v26  ;;  %v1148_v10 = vld [vmem:[#allocation10 + $0x6e0] sm:$0xff] }
  0xca   :  { %v3811_v32 = vcombine.high %v981_v27, %v993_v28  ;;  %v3810_v37 = vcombine.low %v981_v27, %v993_v28  ;;  %v1160_v14 = vld [vmem:[#allocation10 + $0x740] sm:$0xff]  ;;  %v1125_v27 = vld [vmem:[#allocation10 + $0x628] sm:$0xff] }
  0xcb   :  { %2989 = vmatpush2.bf16.msra.mxu0 %v3996_v33  ;;  %3030 = vmatpush2.bf16.msra.mxu1 %v3998_v20  ;;  %v956_v33 = vld [vmem:[#allocation10 + $0xe0] sm:$0xff]  ;;  %v1137_v28 = vld [vmem:[#allocation10 + $0x688] sm:$0xff] }
  0xcc   :  { %2990 = vmatprep.subr.bf16.mxu0 %v3973_v34  ;;  %3031 = vmatprep.subr.bf16.mxu1 %v3975_v35  ;;  %v968_v20 = vld [vmem:[#allocation10 + $0x140] sm:$0xff]  ;;  %v957_v34 = vld [vmem:[#allocation10 + $0xe8] sm:$0xff] }
  0xcd   :  { %v969_v35 = vld [vmem:[#allocation10 + $0x148] sm:$0xff]  ;;  %v3785_v38 = vcombine.high %v956_v33, %v968_v20  ;;  %v1124_v25 = vld [vmem:[#allocation10 + $0x620] sm:$0xff] }
  0xce   :  { %v1136_v26 = vld [vmem:[#allocation10 + $0x680] sm:$0xff] }
  0xcf   :  { %2991 = vmatpush2.bf16.msra.mxu0 %v3972_v40  ;;  %3032 = vmatpush2.bf16.msra.mxu1 %v3974_v41  ;;  %v944_v40 = vld [vmem:[#allocation10 + $0x80] sm:$0xff]  ;;  %v3787_v41 = vcombine.high %v957_v34, %v969_v35 }
  0xd0   :  { %2992 = vmatprep.subr.bf16.mxu0 %v3949_v42  ;;  %3033 = vmatprep.subr.bf16.mxu1 %v3951_v43  ;;  %v933_v42 = vld [vmem:[#allocation10 + $0x28] sm:$0xff]  ;;  %v1220_v43 = vld [vmem:[#allocation10 + $0x920] sm:$0xff]  ;;  %v3760_v54 = vcombine.low %v932_v39, %v944_v40 }
  0xd1   :  { %v3763_v52 = vcombine.high %v933_v42, %v945_v45  ;;  %v4048_v55 = vcombine.low %v1220_v43, %v1232_v44 }
  0xd3   :  { %2993 = vmatpush2.bf16.msra.mxu0 %v3948_v48  ;;  %3034 = vmatpush2.bf16.msra.mxu1 %v3950_v49  ;;  %v3784_v48 = vcombine.low %v956_v33, %v968_v20  ;;  %v3786_v49 = vcombine.low %v957_v34, %v969_v35  ;;  %v3955_v20 = vcombine.high %v1125_v27, %v1137_v28  ;;  %v4417_v34 = vsub.s32 0, %v4360_v7 }
  0xd4   :  { %3044 = vmatprep.subr.bf16.mxu0 %v3929_v50  ;;  %3085 = vmatprep.subr.bf16.mxu1 %v3931_v51  ;;  %v3761_v50 = vcombine.high %v932_v39, %v944_v40  ;;  %v4049_v51 = vcombine.high %v1220_v43, %v1232_v44  ;;  %v4420_v35 = vsub.s32 1, %v4360_v7  ;;  %v4425_v39 = vsub.s32 2, %v4360_v7 }
  0xd5   :  { %v4428_v40 = vsub.s32 3, %v4360_v7  ;;  %v3952_v43 = vcombine.low %v1124_v25, %v1136_v26  ;;  %v3954_v44 = vcombine.low %v1125_v27, %v1137_v28 }
  0xd6   :  { %2995 = vmatmul.mubr.bf16.vlgmr.msra.gmra.mxu0 %v4394_v3  ;;  %3036 = vmatmul.mubr.bf16.vlgmr.msra.gmra.mxu1 %v4394_v3 }
  0xd7   :  { %3045 = vmatpush1.bf16.msra.mxu0 %v3928_v56  ;;  %3086 = vmatpush1.bf16.msra.mxu1 %v3930_v57  ;;  %v3762_v56 = vcombine.low %v933_v42, %v945_v45  ;;  %v2836_v57 = vand.u32 %v4049_v51, %v4386_v16  ;;  %v1115_v42 = vld [vmem:[#allocation10 + $0x5d8] sm:$0xff]  ;;  %v1090_v51 = vld [vmem:[#allocation10 + $0x510] sm:$0xff] }
  0xd8   :  { %3046 = vmatprep.subr.bf16.mxu0 %v3905_v58  ;;  %3087 = vmatprep.subr.bf16.mxu1 %v3907_v59  ;;  %v4050_v58 = vcombine.low %v1221_v46, %v1233_v47  ;;  %v2842_v59 = vand.u32 %v4051_v53, %v4386_v16 }
  0xd9   :  { %4068 = vmatprep.mubr.msk.bf16.mxu0 %vm2800_vm2, %v4376_v0  ;;  %4069 = vmatprep.mubr.msk.bf16.mxu1 %vm2800_vm2, %v4376_v0 }
  0xdb   :  { %3047 = vmatpush1.bf16.msra.mxu0 %v3904_v1  ;;  %3088 = vmatpush1.bf16.msra.mxu1 %v3906_v2  ;;  %v2833_v1 = vand.u32 %v4048_v55, %v4386_v16  ;;  %v2839_v2 = vand.u32 %v4050_v58, %v4386_v16  ;;  %v1079_v55 = vld [vmem:[#allocation10 + $0x4b8] sm:$0xff] }
  0xdc   :  { %3048 = vmatprep.subr.bf16.mxu0 %v3881_v4  ;;  %3089 = vmatprep.subr.bf16.mxu1 %v3883_v5  ;;  %v4025_v4 = vcombine.high %v1196_v60, %v1208_v61  ;;  %v4027_v5 = vcombine.high %v1197_v62, %v1209_v63 }
  0xdf   :  { %3049 = vmatpush1.bf16.msra.mxu0 %v3880_v12  ;;  %3090 = vmatpush1.bf16.msra.mxu1 %v3882_v13  ;;  %v4024_v12 = vcombine.low %v1196_v60, %v1208_v61  ;;  %v4026_v13 = vcombine.low %v1197_v62, %v1209_v63  ;;  %v4442_v63 = vsub.s32 4, %v4360_v7 }
  0xe0   :  { %3050 = vmatprep.subr.bf16.mxu0 %v3857_v15  ;;  %3091 = vmatprep.subr.bf16.mxu1 %v3859_v17  ;;  %v4001_v15 = vcombine.high %v1172_v6, %v1184_v8  ;;  %v4003_v17 = vcombine.high %v1173_v9, %v1185_v11 }
  0xe3   :  { %3051 = vmatpush1.bf16.msra.mxu0 %v3856_v21  ;;  %3092 = vmatpush1.bf16.msra.mxu1 %v3858_v22  ;;  %v4000_v21 = vcombine.low %v1172_v6, %v1184_v8  ;;  %v4002_v22 = vcombine.low %v1173_v9, %v1185_v11  ;;  %v4449_v6 = vsub.s32 5, %v4360_v7  ;;  %v1054_v8 = vld [vmem:[#allocation10 + $0x3f0] sm:$0xff] }
  0xe4   :  { %3052 = vmatprep.subr.bf16.mxu0 %v3833_v23  ;;  %3093 = vmatprep.subr.bf16.mxu1 %v3835_v24  ;;  %v3977_v23 = vcombine.high %v1148_v10, %v1160_v14  ;;  %v3979_v24 = vcombine.high %v1149_v18, %v1161_v19  ;;  %v1066_v9 = vld [vmem:[#allocation10 + $0x450] sm:$0xff] }
  0xe7   :  { %3053 = vmatpush1.bf16.msra.mxu0 %v3832_v29  ;;  %3094 = vmatpush1.bf16.msra.mxu1 %v3834_v30  ;;  %v3976_v29 = vcombine.low %v1148_v10, %v1160_v14  ;;  %v3978_v30 = vcombine.low %v1149_v18, %v1161_v19  ;;  %v1055_v10 = vld [vmem:[#allocation10 + $0x3f8] sm:$0xff] }
  0xe8   :  { %3054 = vmatprep.subr.bf16.mxu0 %v3809_v31  ;;  %3095 = vmatprep.subr.bf16.mxu1 %v3811_v32  ;;  %v3953_v31 = vcombine.high %v1124_v25, %v1136_v26  ;;  %v4249_v32 = vmov 1983009808   ;;  %v1067_v14 = vld [vmem:[#allocation10 + $0x458] sm:$0xff]  ;;  %v3885_v25 = vcombine.high %v1054_v8, %v1066_v9 }
  0xe9   :  { %v3399_v33 = vunpack.c.l.s4 %v4249_v32 }
  0xeb   :  { %3055 = vmatpush1.bf16.msra.mxu0 %v3808_v36  ;;  %3096 = vmatpush1.bf16.msra.mxu1 %v3810_v37  ;;  %v1102_v36 = vld [vmem:[#allocation10 + $0x570] sm:$0xff]  ;;  %v3400_v45 = vunpack.c.0.s8 %v3399_v33 }
  0xec   :  { %3056 = vmatprep.subr.bf16.mxu0 %v3785_v38  ;;  %3097 = vmatprep.subr.bf16.mxu1 %v3787_v41  ;;  %v1114_v37 = vld [vmem:[#allocation10 + $0x5d0] sm:$0xff]  ;;  %v4422_v38 = vld [vmem:[#allocation7] sm:$0xff]  ;;  %v1103_v41 = vld [vmem:[#allocation10 + $0x578] sm:$0xff] }
  0xed   :  { %v3933_v46 = vcombine.high %v1102_v36, %v1114_v37  ;;  %v786_v47 = vrot.slane %v4422_v38, %v4417_v34  ;;  %v794_v53 = vrot.slane %v4422_v38, %v4425_v39  ;;  %v3932_v58 = vcombine.low %v1102_v36, %v1114_v37  ;;  %v1031_v37 = vld [vmem:[#allocation10 + $0x338] sm:$0xff] }
  0xee   :  { %v4439_v60 = vsub.s32 %v3400_v45, %v4360_v7  ;;  %v3934_v61 = vcombine.low %v1103_v41, %v1115_v42  ;;  %v806_v28 = vrot.slane %v4422_v38, %v4449_v6 }
  0xef   :  { %3057 = vmatpush1.bf16.msra.mxu0 %v3784_v48  ;;  %3098 = vmatpush1.bf16.msra.mxu1 %v3786_v49  ;;  %v790_v48 = vrot.slane %v4422_v38, %v4420_v35  ;;  %v3935_v49 = vcombine.high %v1103_v41, %v1115_v42  ;;  %v1043_v41 = vld [vmem:[#allocation10 + $0x398] sm:$0xff] }
  0xf0   :  { %3058 = vmatprep.subr.bf16.mxu0 %v3761_v50  ;;  %3099 = vmatprep.subr.bf16.mxu1 %v3763_v52  ;;  %v1078_v50 = vld [vmem:[#allocation10 + $0x4b0] sm:$0xff] }
  0xf1   :  { %v3909_v62 = vcombine.high %v1078_v50, %v1090_v51 }
  0xf3   :  { %3059 = vmatpush1.bf16.msra.mxu0 %v3760_v54  ;;  %3100 = vmatpush1.bf16.msra.mxu1 %v3762_v56  ;;  %v798_v54 = vrot.slane %v4422_v38, %v4428_v40  ;;  %v1091_v56 = vld [vmem:[#allocation10 + $0x518] sm:$0xff] }
  0xf4   :  { %3066 = vmatprep.subr.bf16.mxu0 %v2836_v57  ;;  %3107 = vmatprep.subr.bf16.mxu1 %v2842_v59 }
  0xf7   :  { %3067 = vmatpush2.bf16.msra.mxu0 %v2833_v1  ;;  %3108 = vmatpush2.bf16.msra.mxu1 %v2839_v2 }
  0xf8   :  { %3068 = vmatprep.subr.bf16.mxu0 %v4025_v4  ;;  %3109 = vmatprep.subr.bf16.mxu1 %v4027_v5  ;;  %v3911_v5 = vcombine.high %v1079_v55, %v1091_v56 }
  0xfb   :  { %3069 = vmatpush2.bf16.msra.mxu0 %v4024_v12  ;;  %3110 = vmatpush2.bf16.msra.mxu1 %v4026_v13 }
  0xfc   :  { %3070 = vmatprep.subr.bf16.mxu0 %v4001_v15  ;;  %3111 = vmatprep.subr.bf16.mxu1 %v4003_v17  ;;  %v4457_v15 = vsub.s32 6, %v4360_v7  ;;  %v4460_v17 = vsub.s32 7, %v4360_v7  ;;  %v802_v7 = vrot.slane %v4422_v38, %v4442_v63 }
  0xfe   :  { %v814_v36 = vrot.slane %v4422_v38, %v4460_v17 }
  0xff   :  { %3071 = vmatpush2.bf16.msra.mxu0 %v4000_v21  ;;  %3112 = vmatpush2.bf16.msra.mxu1 %v4002_v22  ;;  %v3908_v21 = vcombine.low %v1078_v50, %v1090_v51  ;;  %v3910_v22 = vcombine.low %v1079_v55, %v1091_v56  ;;  %v1006_v51 = vld [vmem:[#allocation10 + $0x270] sm:$0xff] }
 0x100   :  { %3072 = vmatprep.subr.bf16.mxu0 %v3977_v23  ;;  %3113 = vmatprep.subr.bf16.mxu1 %v3979_v24  ;;  %v4489_v56 = vld [vmem:[#allocation7 + $0x8] sm:$0xff] }
 0x103   :  { %3073 = vmatpush2.bf16.msra.mxu0 %v3976_v29  ;;  %3114 = vmatpush2.bf16.msra.mxu1 %v3978_v30  ;;  %v3887_v29 = vcombine.high %v1055_v10, %v1067_v14  ;;  %v1030_v30 = vld [vmem:[#allocation10 + $0x330] sm:$0xff] }
 0x104   :  { %3074 = vmatprep.subr.bf16.mxu0 %v3953_v31  ;;  %3115 = vmatprep.subr.bf16.mxu1 %v3955_v20  ;;  %v1042_v31 = vld [vmem:[#allocation10 + $0x390] sm:$0xff]  ;;  %v810_v20 = vrot.slane %v4422_v38, %v4457_v15  ;;  %v3863_v38 = vcombine.high %v1031_v37, %v1043_v41 }
 0x106   :  { %v319_v52 = vpop.f32.mrf.mxu0  ;;  %v360_v57 = vpop.f32.mrf.mxu1 }
 0x107   :  { %3075 = vmatpush2.bf16.msra.mxu0 %v3952_v43  ;;  %3116 = vmatpush2.bf16.msra.mxu1 %v3954_v44  ;;  %v4444_v1 = vadd.f32 %v786_v47, %v319_v52  ;;  %v4451_v11 = vadd.f32 %v794_v53, %v360_v57  ;;  %v3884_v43 = vcombine.low %v1054_v8, %v1066_v9  ;;  %v1018_v52 = vld [vmem:[#allocation10 + $0x2d0] sm:$0xff]  ;;  %v1007_v57 = vld [vmem:[#allocation10 + $0x278] sm:$0xff] }
 0x108   :  { %v321_v59 = vpop.f32.mrf.mxu0  ;;  %3126 = vmatprep.subr.bf16.mxu0 %v3933_v46  ;;  %v362_v4 = vpop.f32.mrf.mxu1  ;;  %3167 = vmatprep.subr.bf16.mxu1 %v3935_v49  ;;  %v3886_v46 = vcombine.low %v1055_v10, %v1067_v14  ;;  %v3861_v47 = vcombine.high %v1030_v30, %v1042_v31  ;;  %v3862_v8 = vcombine.low %v1031_v37, %v1043_v41 }
 0x109   :  { %v4446_v2 = vadd.f32 %v790_v48, %v321_v59  ;;  %v4453_v12 = vadd.f32 %v798_v54, %v362_v4  ;;  %v3837_v9 = vcombine.high %v1006_v51, %v1018_v52  ;;  %v818_v14 = vrot.slane %v4489_v56, %v4417_v34 }
 0x10a   :  { %3077 = vmatmul.mubr.bf16.vlgmr.msra.gmra.mxu0 %v4394_v3  ;;  %v323_v13 = vpop.f32.mrf.mxu0  ;;  %3118 = vmatmul.mubr.bf16.vlgmr.msra.gmra.mxu1 %v4394_v3  ;;  %v364_v19 = vpop.f32.mrf.mxu1 }
 0x10b   :  { %v3396_v18 = vcombine.low %v4444_v1, %v4446_v2  ;;  %3127 = vmatpush1.bf16.msra.mxu0 %v3932_v58  ;;  %v3397_v23 = vcombine.low %v4451_v11, %v4453_v12  ;;  %3168 = vmatpush1.bf16.msra.mxu1 %v3934_v61  ;;  %v1019_v58 = vld [vmem:[#allocation10 + $0x2d8] sm:$0xff] }
 0x10c   :  { %v324_v24 = vpop.f32.mrf.mxu0  ;;  %3128 = vmatprep.subr.bf16.mxu0 %v3909_v62  ;;  %v365_v27 = vpop.f32.mrf.mxu1  ;;  %3169 = vmatprep.subr.bf16.mxu1 %v3911_v5  ;;  %v3860_v62 = vcombine.low %v1030_v30, %v1042_v31  ;;  %v3839_v19 = vcombine.high %v1007_v57, %v1019_v58 }
 0x10d   :  { %v3404_v26 = vrot.slane %v3396_v18, %v4439_v60  ;;  %4070 = vmatprep.mubr.msk.bf16.mxu0 %vm2800_vm2, %v4376_v0  ;;  %v3411_v32 = vrot.slane %v3397_v23, %v4439_v60  ;;  %4071 = vmatprep.mubr.msk.bf16.mxu1 %vm2800_vm2, %v4376_v0  ;;  %v822_v18 = vrot.slane %v4489_v56, %v4420_v35  ;;  %v995_v27 = vld [vmem:[#allocation10 + $0x218] sm:$0xff] }
 0x10e   :  { %v401_v33 = vpop.f32.mrf.mxu0  ;;  %v442_v42 = vpop.f32.mrf.mxu1 }
 0x10f   :  { %3129 = vmatpush1.bf16.msra.mxu0 %v3908_v21  ;;  %v3412_v44 = vcombine.low %v3404_v26, %v3411_v32  ;;  %3170 = vmatpush1.bf16.msra.mxu1 %v3910_v22  ;;  %v4481_v48 = vadd.f32 %v802_v7, %v401_v33  ;;  %v4485_v53 = vadd.f32 %v810_v20, %v442_v42  ;;  %v982_v21 = vld [vmem:[#allocation10 + $0x1b0] sm:$0xff]  ;;  %v983_v26 = vld [vmem:[#allocation10 + $0x1b8] sm:$0xff] }
 0x110   :  { %v403_v45 = vpop.f32.mrf.mxu0  ;;  %3130 = vmatprep.subr.bf16.mxu0 %v3885_v25  ;;  %v444_v50 = vpop.f32.mrf.mxu1  ;;  %3171 = vmatprep.subr.bf16.mxu1 %v3887_v29  ;;  %v994_v22 = vld [vmem:[#allocation10 + $0x210] sm:$0xff]  ;;  %v826_v7 = vrot.slane %v4489_v56, %v4425_v39  ;;  %v830_v25 = vrot.slane %v4489_v56, %v4428_v40  ;;  %v3836_v29 = vcombine.low %v1006_v51, %v1018_v52 }
 0x111   :  { %v4483_v49 = vadd.f32 %v806_v28, %v403_v45  ;;  %3504 = vst [vmem:[#allocation11] sm:$0xff] %v3412_v44  ;;  %v4487_v54 = vadd.f32 %v814_v36, %v444_v50  ;;  %v3838_v32 = vcombine.low %v1007_v57, %v1019_v58  ;;  %v3813_v33 = vcombine.high %v982_v21, %v994_v22  ;;  %v958_v42 = vld [vmem:[#allocation10 + $0xf0] sm:$0xff]  ;;  %v971_v50 = vld [vmem:[#allocation10 + $0x158] sm:$0xff] }
 0x112   :  { %v405_v55 = vpop.f32.mrf.mxu0  ;;  %v446_v61 = vpop.f32.mrf.mxu1  ;;  %v3815_v41 = vcombine.high %v983_v26, %v995_v27  ;;  %v3812_v52 = vcombine.low %v982_v21, %v994_v22  ;;  %v3814_v58 = vcombine.low %v983_v26, %v995_v27  ;;  %v842_v22 = vrot.slane %v4489_v56, %v4457_v15 }
 0x113   :  { %v3413_v59 = vcombine.low %v4481_v48, %v4483_v49  ;;  %3131 = vmatpush1.bf16.msra.mxu0 %v3884_v43  ;;  %v3414_v4 = vcombine.low %v4485_v53, %v4487_v54  ;;  %3172 = vmatpush1.bf16.msra.mxu1 %v3886_v46  ;;  %v970_v43 = vld [vmem:[#allocation10 + $0x150] sm:$0xff] }
 0x114   :  { %v406_v5 = vpop.f32.mrf.mxu0  ;;  %3132 = vmatprep.subr.bf16.mxu0 %v3861_v47  ;;  %v447_v10 = vpop.f32.mrf.mxu1  ;;  %3173 = vmatprep.subr.bf16.mxu1 %v3863_v38  ;;  %v959_v47 = vld [vmem:[#allocation10 + $0xf8] sm:$0xff]  ;;  %v4517_v61 = vld [vmem:[#allocation10 + $0x30] sm:$0xff]  ;;  %v3788_v27 = vcombine.low %v958_v42, %v970_v43 }
 0x115   :  { %v3421_v13 = vrot.slane %v3413_v59, %v4439_v60  ;;  %v3428_v23 = vrot.slane %v3414_v4, %v4439_v60  ;;  %v3789_v59 = vcombine.high %v958_v42, %v970_v43  ;;  %v935_v10 = vld [vmem:[#allocation10 + $0x38] sm:$0xff] }
 0x116   :  { %v483_v24 = vpop.f32.mrf.mxu0  ;;  %v524_v28 = vpop.f32.mrf.mxu1 }
 0x117   :  { %3133 = vmatpush1.bf16.msra.mxu0 %v3860_v62  ;;  %v3429_v30 = vcombine.low %v3421_v13, %v3428_v23  ;;  %3174 = vmatpush1.bf16.msra.mxu1 %v3862_v8  ;;  %v4505_v20 = vadd.f32 %v818_v14, %v483_v24  ;;  %v4509_v44 = vadd.f32 %v826_v7, %v524_v28  ;;  %v4519_v62 = vld [vmem:[#allocation10 + $0x90] sm:$0xff]  ;;  %v947_v24 = vld [vmem:[#allocation10 + $0x98] sm:$0xff] }
 0x118   :  { %v485_v31 = vpop.f32.mrf.mxu0  ;;  %3134 = vmatprep.subr.bf16.mxu0 %v3837_v9  ;;  %v526_v37 = vpop.f32.mrf.mxu1  ;;  %3175 = vmatprep.subr.bf16.mxu1 %v3839_v19  ;;  %v834_v8 = vrot.slane %v4489_v56, %v4442_v63  ;;  %v838_v9 = vrot.slane %v4489_v56, %v4449_v6  ;;  %v3791_v13 = vcombine.high %v959_v47, %v971_v50  ;;  %v1222_v14 = vld [vmem:[#allocation10 + $0x930] sm:$0xff]  ;;  %v1223_v7 = vld [vmem:[#allocation10 + $0x938] sm:$0xff] }
 0x119   :  { %v4507_v36 = vadd.f32 %v822_v18, %v485_v31  ;;  %3505 = vst [vmem:[#allocation11 + $0x8] sm:$0xff] %v3429_v30  ;;  %v4511_v45 = vadd.f32 %v830_v25, %v526_v37  ;;  %v1234_v18 = vld [vmem:[#allocation10 + $0x990] sm:$0xff]  ;;  %v846_v23 = vrot.slane %v4489_v56, %v4460_v17  ;;  %v1235_v25 = vld [vmem:[#allocation10 + $0x998] sm:$0xff]  ;;  %v3790_v28 = vcombine.low %v959_v47, %v971_v50 }
 0x11a   :  { %v487_v46 = vpop.f32.mrf.mxu0  ;;  %v528_v51 = vpop.f32.mrf.mxu1  ;;  %v3765_v31 = vcombine.high %v4517_v61, %v4519_v62  ;;  %v4541_v47 = vld [vmem:[#allocation7 + $0x10] sm:$0xff] }
 0x11b   :  { %v3430_v38 = vcombine.low %v4505_v20, %v4507_v36  ;;  %3135 = vmatpush1.bf16.msra.mxu0 %v3836_v29  ;;  %v3431_v55 = vcombine.low %v4509_v44, %v4511_v45  ;;  %3176 = vmatpush1.bf16.msra.mxu1 %v3838_v32  ;;  %v4053_v32 = vcombine.high %v1222_v14, %v1234_v18 }
 0x11c   :  { %v488_v57 = vpop.f32.mrf.mxu0  ;;  %3136 = vmatprep.subr.bf16.mxu0 %v3813_v33  ;;  %v529_v5 = vpop.f32.mrf.mxu1  ;;  %3177 = vmatprep.subr.bf16.mxu1 %v3815_v41  ;;  %v3767_v41 = vcombine.high %v935_v10, %v947_v24  ;;  %v4055_v46 = vcombine.high %v1223_v7, %v1235_v25 }
 0x11d   :  { %v3438_v4 = vrot.slane %v3430_v38, %v4439_v60  ;;  %v3445_v19 = vrot.slane %v3431_v55, %v4439_v60  ;;  %v3766_v55 = vcombine.low %v935_v10, %v947_v24  ;;  %v4052_v57 = vcombine.low %v1222_v14, %v1234_v18  ;;  %v1198_v10 = vld [vmem:[#allocation10 + $0x870] sm:$0xff]  ;;  %v1211_v24 = vld [vmem:[#allocation10 + $0x8d8] sm:$0xff] }
 0x11e   :  { %v565_v21 = vpop.f32.mrf.mxu0  ;;  %v606_v26 = vpop.f32.mrf.mxu1  ;;  %v4054_v5 = vcombine.low %v1223_v7, %v1235_v25  ;;  %v1210_v14 = vld [vmem:[#allocation10 + $0x8d0] sm:$0xff] }
 0x11f   :  { %3137 = vmatpush1.bf16.msra.mxu0 %v3812_v52  ;;  %v3446_v29 = vcombine.low %v3438_v4, %v3445_v19  ;;  %3178 = vmatpush1.bf16.msra.mxu1 %v3814_v58  ;;  %v4533_v33 = vadd.f32 %v834_v8, %v565_v21  ;;  %v4537_v38 = vadd.f32 %v842_v22, %v606_v26 }
 0x120   :  { %v567_v30 = vpop.f32.mrf.mxu0  ;;  %3138 = vmatprep.subr.bf16.mxu0 %v3789_v59  ;;  %v608_v56 = vpop.f32.mrf.mxu1  ;;  %3179 = vmatprep.subr.bf16.mxu1 %v3791_v13  ;;  %v3764_v52 = vcombine.low %v4517_v61, %v4519_v62  ;;  %v2848_v4 = vand.u32 %v4053_v32, %v4386_v16  ;;  %v850_v13 = vrot.slane %v4541_v47, %v4417_v34 }
 0x121   :  { %v4535_v37 = vadd.f32 %v838_v9, %v567_v30  ;;  %3506 = vst [vmem:[#allocation11 + $0x10] sm:$0xff] %v3446_v29  ;;  %v4539_v42 = vadd.f32 %v846_v23, %v608_v56  ;;  %v854_v61 = vrot.slane %v4541_v47, %v4420_v35  ;;  %v2854_v62 = vand.u32 %v4055_v46, %v4386_v16  ;;  %v1199_v23 = vld [vmem:[#allocation10 + $0x878] sm:$0xff]  ;;  %v1174_v30 = vld [vmem:[#allocation10 + $0x7b0] sm:$0xff] }
 0x122   :  { %v569_v43 = vpop.f32.mrf.mxu0  ;;  %v610_v51 = vpop.f32.mrf.mxu1  ;;  %v858_v21 = vrot.slane %v4541_v47, %v4425_v39  ;;  %v862_v22 = vrot.slane %v4541_v47, %v4428_v40  ;;  %v2845_v34 = vand.u32 %v4052_v57, %v4386_v16  ;;  %v2851_v26 = vand.u32 %v4054_v5, %v4386_v16  ;;  %v1175_v46 = vld [vmem:[#allocation10 + $0x7b8] sm:$0xff] }
 0x123   :  { %v3447_v50 = vcombine.low %v4533_v33, %v4535_v37  ;;  %3139 = vmatpush1.bf16.msra.mxu0 %v3788_v27  ;;  %v3448_v58 = vcombine.low %v4537_v38, %v4539_v42  ;;  %3180 = vmatpush1.bf16.msra.mxu1 %v3790_v28  ;;  %v4029_v27 = vcombine.high %v1198_v10, %v1210_v14  ;;  %v1187_v43 = vld [vmem:[#allocation10 + $0x818] sm:$0xff] }
 0x124   :  { %v570_v59 = vpop.f32.mrf.mxu0  ;;  %3140 = vmatprep.subr.bf16.mxu0 %v3765_v31  ;;  %v611_v9 = vpop.f32.mrf.mxu1  ;;  %3181 = vmatprep.subr.bf16.mxu1 %v3767_v41  ;;  %v4031_v40 = vcombine.high %v1199_v23, %v1211_v24  ;;  %v1186_v31 = vld [vmem:[#allocation10 + $0x810] sm:$0xff] }
 0x125   :  { %v3455_v8 = vrot.slane %v3447_v50, %v4439_v60  ;;  %v3462_v18 = vrot.slane %v3448_v58, %v4439_v60  ;;  %v4030_v58 = vcombine.low %v1199_v23, %v1211_v24  ;;  %v4005_v59 = vcombine.high %v1174_v30, %v1186_v31 }
 0x126   :  { %v647_v19 = vpop.f32.mrf.mxu0  ;;  %v688_v7 = vpop.f32.mrf.mxu1  ;;  %v870_v9 = vrot.slane %v4541_v47, %v4449_v6 }
 0x127   :  { %3141 = vmatpush1.bf16.msra.mxu0 %v3764_v52  ;;  %v3463_v35 = vcombine.low %v3455_v8, %v3462_v18  ;;  %3182 = vmatpush1.bf16.msra.mxu1 %v3766_v55  ;;  %v4563_v28 = vadd.f32 %v850_v13, %v647_v19  ;;  %v4567_v32 = vadd.f32 %v858_v21, %v688_v7  ;;  %v1151_v21 = vld [vmem:[#allocation10 + $0x6f8] sm:$0xff] }
 0x128   :  { %v649_v25 = vpop.f32.mrf.mxu0  ;;  %3148 = vmatprep.subr.bf16.mxu0 %v2848_v4  ;;  %v690_v39 = vpop.f32.mrf.mxu1  ;;  %3189 = vmatprep.subr.bf16.mxu1 %v2854_v62  ;;  %v4028_v52 = vcombine.low %v1198_v10, %v1210_v14  ;;  %v866_v8 = vrot.slane %v4541_v47, %v4442_v63  ;;  %v4007_v13 = vcombine.high %v1175_v46, %v1187_v43  ;;  %v1162_v62 = vld [vmem:[#allocation10 + $0x750] sm:$0xff] }
 0x129   :  { %v4565_v29 = vadd.f32 %v854_v61, %v649_v25  ;;  %3507 = vst [vmem:[#allocation11 + $0x18] sm:$0xff] %v3463_v35  ;;  %v4569_v56 = vadd.f32 %v862_v22, %v690_v39  ;;  %v1150_v61 = vld [vmem:[#allocation10 + $0x6f0] sm:$0xff]  ;;  %v874_v18 = vrot.slane %v4541_v47, %v4457_v15  ;;  %v878_v19 = vrot.slane %v4541_v47, %v4460_v17  ;;  %v1163_v22 = vld [vmem:[#allocation10 + $0x758] sm:$0xff] }
 0x12a   :  { %v651_v41 = vpop.f32.mrf.mxu0  ;;  %v692_v51 = vpop.f32.mrf.mxu1  ;;  %v4004_v63 = vcombine.low %v1174_v30, %v1186_v31  ;;  %v4006_v7 = vcombine.low %v1175_v46, %v1187_v43  ;;  %v3983_v15 = vcombine.high %v1151_v21, %v1163_v22  ;;  %v1138_v17 = vld [vmem:[#allocation10 + $0x690] sm:$0xff]  ;;  %v1127_v30 = vld [vmem:[#allocation10 + $0x638] sm:$0xff]  ;;  %v3980_v43 = vcombine.low %v1150_v61, %v1162_v62 }
 0x12b   :  { %v3464_v50 = vcombine.low %v4563_v28, %v4565_v29  ;;  %3149 = vmatpush2.bf16.msra.mxu0 %v2845_v34  ;;  %v3465_v55 = vcombine.low %v4567_v32, %v4569_v56  ;;  %3190 = vmatpush2.bf16.msra.mxu1 %v2851_v26  ;;  %v3981_v34 = vcombine.high %v1150_v61, %v1162_v62  ;;  %v1139_v31 = vld [vmem:[#allocation10 + $0x698] sm:$0xff] }
 0x12c   :  { %v652_v57 = vpop.f32.mrf.mxu0  ;;  %3150 = vmatprep.subr.bf16.mxu0 %v4029_v27  ;;  %v693_v5 = vpop.f32.mrf.mxu1  ;;  %3191 = vmatprep.subr.bf16.mxu1 %v4031_v40  ;;  %v1126_v27 = vld [vmem:[#allocation10 + $0x630] sm:$0xff] }
 0x12d   :  { %v3472_v4 = vrot.slane %v3464_v50, %v4439_v60  ;;  %v3479_v10 = vrot.slane %v3465_v55, %v4439_v60  ;;  %v3957_v55 = vcombine.high %v1126_v27, %v1138_v17  ;;  %v1116_v5 = vld [vmem:[#allocation10 + $0x5e0] sm:$0xff]  ;;  %v3956_v61 = vcombine.low %v1126_v27, %v1138_v17  ;;  %v1069_v27 = vld [vmem:[#allocation10 + $0x468] sm:$0xff] }
 0x12e   :  { %v729_v14 = vpop.f32.mrf.mxu0  ;;  %v770_v23 = vpop.f32.mrf.mxu1 }
 0x12f   :  { %3151 = vmatpush2.bf16.msra.mxu0 %v4028_v52  ;;  %v3480_v24 = vcombine.low %v3472_v4, %v3479_v10  ;;  %3192 = vmatpush2.bf16.msra.mxu1 %v4030_v58  ;;  %v4585_v35 = vadd.f32 %v866_v8, %v729_v14  ;;  %v4589_v47 = vadd.f32 %v874_v18, %v770_v23  ;;  %v1104_v4 = vld [vmem:[#allocation10 + $0x580] sm:$0xff]  ;;  %v1093_v23 = vld [vmem:[#allocation10 + $0x528] sm:$0xff] }
 0x130   :  { %v731_v6 = vpop.f32.mrf.mxu0  ;;  %3152 = vmatprep.subr.bf16.mxu0 %v4005_v59  ;;  %v772_v26 = vpop.f32.mrf.mxu1  ;;  %3193 = vmatprep.subr.bf16.mxu1 %v4007_v13  ;;  %v3982_v52 = vcombine.low %v1151_v21, %v1163_v22  ;;  %v3959_v59 = vcombine.high %v1127_v30, %v1139_v31  ;;  %v1117_v13 = vld [vmem:[#allocation10 + $0x5e8] sm:$0xff]  ;;  %v3958_v10 = vcombine.low %v1127_v30, %v1139_v31  ;;  %v1092_v21 = vld [vmem:[#allocation10 + $0x520] sm:$0xff] }
 0x131   :  { %v4587_v25 = vadd.f32 %v870_v9, %v731_v6  ;;  %3508 = vst [vmem:[#allocation11 + $0x20] sm:$0xff] %v3480_v24  ;;  %v4591_v39 = vadd.f32 %v878_v19, %v772_v26  ;;  %v1105_v9 = vld [vmem:[#allocation10 + $0x588] sm:$0xff]  ;;  %v3937_v14 = vcombine.high %v1104_v4, %v1116_v5  ;;  %v1080_v19 = vld [vmem:[#allocation10 + $0x4c0] sm:$0xff] }
 0x132   :  { %v733_v40 = vpop.f32.mrf.mxu0  ;;  %v774_v46 = vpop.f32.mrf.mxu1  ;;  %v3939_v18 = vcombine.high %v1105_v9, %v1117_v13  ;;  %v1081_v22 = vld [vmem:[#allocation10 + $0x4c8] sm:$0xff]  ;;  %v3938_v24 = vcombine.low %v1105_v9, %v1117_v13  ;;  %v3913_v6 = vcombine.high %v1080_v19, %v1092_v21  ;;  %v1068_v26 = vld [vmem:[#allocation10 + $0x460] sm:$0xff]  ;;  %v3912_v17 = vcombine.low %v1080_v19, %v1092_v21 }
 0x133   :  { %v3481_v41 = vcombine.low %v4585_v35, %v4587_v25  ;;  %3153 = vmatpush2.bf16.msra.mxu0 %v4004_v63  ;;  %v3482_v50 = vcombine.low %v4589_v47, %v4591_v39  ;;  %3194 = vmatpush2.bf16.msra.mxu1 %v4006_v7  ;;  %v3936_v63 = vcombine.low %v1104_v4, %v1116_v5  ;;  %v1044_v46 = vld [vmem:[#allocation10 + $0x3a0] sm:$0xff]  ;;  %v1009_v4 = vld [vmem:[#allocation10 + $0x288] sm:$0xff] }
 0x134   :  { %v734_v51 = vpop.f32.mrf.mxu0  ;;  %3154 = vmatprep.subr.bf16.mxu0 %v3981_v34  ;;  %v775_v58 = vpop.f32.mrf.mxu1  ;;  %3195 = vmatprep.subr.bf16.mxu1 %v3983_v15  ;;  %v3915_v7 = vcombine.high %v1081_v22, %v1093_v23  ;;  %v1056_v34 = vld [vmem:[#allocation10 + $0x400] sm:$0xff]  ;;  %v1057_v15 = vld [vmem:[#allocation10 + $0x408] sm:$0xff]  ;;  %v3914_v40 = vcombine.low %v1081_v22, %v1093_v23 }
 0x135   :  { %v3489_v57 = vrot.slane %v3481_v41, %v4439_v60  ;;  %v3496_v8 = vrot.slane %v3482_v50, %v4439_v60  ;;  %v3889_v30 = vcombine.high %v1056_v34, %v1068_v26  ;;  %v3891_v31 = vcombine.high %v1057_v15, %v1069_v27  ;;  %v1032_v41 = vld [vmem:[#allocation10 + $0x340] sm:$0xff]  ;;  %v1045_v50 = vld [vmem:[#allocation10 + $0x3a8] sm:$0xff] }
 0x136   :  { %v3888_v51 = vcombine.low %v1056_v34, %v1068_v26  ;;  %v1008_v58 = vld [vmem:[#allocation10 + $0x280] sm:$0xff]  ;;  %v1021_v5 = vld [vmem:[#allocation10 + $0x2e8] sm:$0xff] }
 0x137   :  { %3155 = vmatpush2.bf16.msra.mxu0 %v3980_v43  ;;  %v3497_v62 = vcombine.low %v3489_v57, %v3496_v8  ;;  %3196 = vmatpush2.bf16.msra.mxu1 %v3982_v52  ;;  %v1033_v43 = vld [vmem:[#allocation10 + $0x348] sm:$0xff]  ;;  %v3890_v52 = vcombine.low %v1057_v15, %v1069_v27  ;;  %v3864_v8 = vcombine.low %v1032_v41, %v1044_v46  ;;  %v936_v27 = vld [vmem:[#allocation10 + $0x40] sm:$0xff] }
 0x138   :  { %3156 = vmatprep.subr.bf16.mxu0 %v3957_v55  ;;  %3197 = vmatprep.subr.bf16.mxu1 %v3959_v59  ;;  %v3865_v55 = vcombine.high %v1032_v41, %v1044_v46  ;;  %v3867_v57 = vcombine.high %v1033_v43, %v1045_v50  ;;  %v1020_v59 = vld [vmem:[#allocation10 + $0x2e0] sm:$0xff]  ;;  %v3866_v9 = vcombine.low %v1033_v43, %v1045_v50  ;;  %v949_v46 = vld [vmem:[#allocation10 + $0xa8] sm:$0xff] }
 0x139   :  { %3509 = vst [vmem:[#allocation11 + $0x28] sm:$0xff] %v3497_v62  ;;  %v3841_v13 = vcombine.high %v1008_v58, %v1020_v59  ;;  %v984_v62 = vld [vmem:[#allocation10 + $0x1c0] sm:$0xff]  ;;  %v3840_v19 = vcombine.low %v1008_v58, %v1020_v59  ;;  %v3842_v21 = vcombine.low %v1009_v4, %v1021_v5  ;;  %v1225_v43 = vld [vmem:[#allocation10 + $0x948] sm:$0xff] }
 0x13a   :  { %v1236_v41 = vld [vmem:[#allocation10 + $0x9a0] sm:$0xff]  ;;  %v1237_v50 = vld [vmem:[#allocation10 + $0x9a8] sm:$0xff] }
 0x13b   :  { %3157 = vmatpush2.bf16.msra.mxu0 %v3956_v61  ;;  %3198 = vmatpush2.bf16.msra.mxu1 %v3958_v10  ;;  %v3843_v61 = vcombine.high %v1009_v4, %v1021_v5  ;;  %v996_v10 = vld [vmem:[#allocation10 + $0x220] sm:$0xff]  ;;  %v4059_v59 = vcombine.high %v1225_v43, %v1237_v50 }
 0x13c   :  { %3208 = vmatprep.subr.bf16.mxu0 %v3937_v14  ;;  %3249 = vmatprep.subr.bf16.mxu1 %v3939_v18  ;;  %v985_v14 = vld [vmem:[#allocation10 + $0x1c8] sm:$0xff]  ;;  %v3817_v22 = vcombine.high %v984_v62, %v996_v10  ;;  %v3816_v34 = vcombine.low %v984_v62, %v996_v10  ;;  %v1200_v62 = vld [vmem:[#allocation10 + $0x880] sm:$0xff] }
 0x13d   :  { %v997_v18 = vld [vmem:[#allocation10 + $0x228] sm:$0xff]  ;;  %v1212_v10 = vld [vmem:[#allocation10 + $0x8e0] sm:$0xff] }
 0x13e   :  { %3159 = vmatmul.mubr.bf16.vlgmr.msra.gmra.mxu0 %v4394_v3  ;;  %3200 = vmatmul.mubr.bf16.vlgmr.msra.gmra.mxu1 %v4394_v3  ;;  %v3819_v23 = vcombine.high %v985_v14, %v997_v18  ;;  %v3818_v26 = vcombine.low %v985_v14, %v997_v18  ;;  %v1201_v14 = vld [vmem:[#allocation10 + $0x888] sm:$0xff] }
 0x13f   :  { %3209 = vmatpush1.bf16.msra.mxu0 %v3936_v63  ;;  %3250 = vmatpush1.bf16.msra.mxu1 %v3938_v24  ;;  %v960_v63 = vld [vmem:[#allocation10 + $0x100] sm:$0xff]  ;;  %v1213_v18 = vld [vmem:[#allocation10 + $0x8e8] sm:$0xff] }
 0x140   :  { %3210 = vmatprep.subr.bf16.mxu0 %v3913_v6  ;;  %3251 = vmatprep.subr.bf16.mxu1 %v3915_v7  ;;  %v972_v24 = vld [vmem:[#allocation10 + $0x160] sm:$0xff]  ;;  %v961_v6 = vld [vmem:[#allocation10 + $0x108] sm:$0xff] }
 0x141   :  { %4072 = vmatprep.mubr.msk.bf16.mxu0 %vm2800_vm2, %v4376_v0  ;;  %4073 = vmatprep.mubr.msk.bf16.mxu1 %vm2800_vm2, %v4376_v0  ;;  %v973_v7 = vld [vmem:[#allocation10 + $0x168] sm:$0xff]  ;;  %v3793_v15 = vcombine.high %v960_v63, %v972_v24 }
 0x143   :  { %3211 = vmatpush1.bf16.msra.mxu0 %v3912_v17  ;;  %3252 = vmatpush1.bf16.msra.mxu1 %v3914_v40  ;;  %v948_v17 = vld [vmem:[#allocation10 + $0xa0] sm:$0xff]  ;;  %v3795_v40 = vcombine.high %v961_v6, %v973_v7 }
 0x144   :  { %3212 = vmatprep.subr.bf16.mxu0 %v3889_v30  ;;  %3253 = vmatprep.subr.bf16.mxu1 %v3891_v31  ;;  %v937_v30 = vld [vmem:[#allocation10 + $0x48] sm:$0xff]  ;;  %v1224_v31 = vld [vmem:[#allocation10 + $0x940] sm:$0xff]  ;;  %v3768_v4 = vcombine.low %v936_v27, %v948_v17 }
 0x145   :  { %v3771_v58 = vcombine.high %v937_v30, %v949_v46  ;;  %v4056_v5 = vcombine.low %v1224_v31, %v1236_v41 }
 0x147   :  { %3213 = vmatpush1.bf16.msra.mxu0 %v3888_v51  ;;  %3254 = vmatpush1.bf16.msra.mxu1 %v3890_v52  ;;  %v3792_v51 = vcombine.low %v960_v63, %v972_v24  ;;  %v3794_v52 = vcombine.low %v961_v6, %v973_v7  ;;  %v1176_v63 = vld [vmem:[#allocation10 + $0x7c0] sm:$0xff]  ;;  %v1177_v6 = vld [vmem:[#allocation10 + $0x7c8] sm:$0xff] }
 0x148   :  { %3214 = vmatprep.subr.bf16.mxu0 %v3865_v55  ;;  %3255 = vmatprep.subr.bf16.mxu1 %v3867_v57  ;;  %v3769_v55 = vcombine.high %v936_v27, %v948_v17  ;;  %v4057_v57 = vcombine.high %v1224_v31, %v1236_v41  ;;  %v1188_v24 = vld [vmem:[#allocation10 + $0x820] sm:$0xff]  ;;  %v1189_v7 = vld [vmem:[#allocation10 + $0x828] sm:$0xff] }
 0x149   :  { %v4011_v27 = vcombine.high %v1177_v6, %v1189_v7  ;;  %v1152_v17 = vld [vmem:[#allocation10 + $0x700] sm:$0xff]  ;;  %v1153_v31 = vld [vmem:[#allocation10 + $0x708] sm:$0xff] }
 0x14a   :  { %v1165_v41 = vld [vmem:[#allocation10 + $0x768] sm:$0xff] }
 0x14b   :  { %3215 = vmatpush1.bf16.msra.mxu0 %v3864_v8  ;;  %3256 = vmatpush1.bf16.msra.mxu1 %v3866_v9  ;;  %v3770_v8 = vcombine.low %v937_v30, %v949_v46  ;;  %v2860_v9 = vand.u32 %v4057_v57, %v4386_v16 }
 0x14c   :  { %3216 = vmatprep.subr.bf16.mxu0 %v3841_v13  ;;  %3257 = vmatprep.subr.bf16.mxu1 %v3843_v61  ;;  %v4058_v13 = vcombine.low %v1225_v43, %v1237_v50  ;;  %v2866_v61 = vand.u32 %v4059_v59, %v4386_v16  ;;  %v4008_v43 = vcombine.low %v1176_v63, %v1188_v24 }
 0x14d   :  { %v3987_v59 = vcombine.high %v1153_v31, %v1165_v41 }
 0x14f   :  { %3217 = vmatpush1.bf16.msra.mxu0 %v3840_v19  ;;  %3258 = vmatpush1.bf16.msra.mxu1 %v3842_v21  ;;  %v2857_v19 = vand.u32 %v4056_v5, %v4386_v16  ;;  %v2863_v21 = vand.u32 %v4058_v13, %v4386_v16  ;;  %v1140_v5 = vld [vmem:[#allocation10 + $0x6a0] sm:$0xff] }
 0x150   :  { %3218 = vmatprep.subr.bf16.mxu0 %v3817_v22  ;;  %3259 = vmatprep.subr.bf16.mxu1 %v3819_v23  ;;  %v4033_v22 = vcombine.high %v1200_v62, %v1212_v10  ;;  %v4035_v23 = vcombine.high %v1201_v14, %v1213_v18 }
 0x153   :  { %3219 = vmatpush1.bf16.msra.mxu0 %v3816_v34  ;;  %3260 = vmatpush1.bf16.msra.mxu1 %v3818_v26  ;;  %v4032_v34 = vcombine.low %v1200_v62, %v1212_v10  ;;  %v4034_v26 = vcombine.low %v1201_v14, %v1213_v18  ;;  %v1141_v62 = vld [vmem:[#allocation10 + $0x6a8] sm:$0xff] }
 0x154   :  { %3220 = vmatprep.subr.bf16.mxu0 %v3793_v15  ;;  %3261 = vmatprep.subr.bf16.mxu1 %v3795_v40  ;;  %v4009_v15 = vcombine.high %v1176_v63, %v1188_v24  ;;  %v1164_v40 = vld [vmem:[#allocation10 + $0x760] sm:$0xff]  ;;  %v1106_v63 = vld [vmem:[#allocation10 + $0x590] sm:$0xff] }
 0x155   :  { %v3984_v18 = vcombine.low %v1152_v17, %v1164_v40 }
 0x157   :  { %3221 = vmatpush1.bf16.msra.mxu0 %v3792_v51  ;;  %3262 = vmatpush1.bf16.msra.mxu1 %v3794_v52  ;;  %v4010_v51 = vcombine.low %v1177_v6, %v1189_v7  ;;  %v3985_v52 = vcombine.high %v1152_v17, %v1164_v40  ;;  %v1107_v6 = vld [vmem:[#allocation10 + $0x598] sm:$0xff]  ;;  %v1082_v40 = vld [vmem:[#allocation10 + $0x4d0] sm:$0xff] }
 0x158   :  { %3222 = vmatprep.subr.bf16.mxu0 %v3769_v55  ;;  %3263 = vmatprep.subr.bf16.mxu1 %v3771_v58  ;;  %v1119_v7 = vld [vmem:[#allocation10 + $0x5f8] sm:$0xff] }
 0x159   :  { %v3943_v17 = vcombine.high %v1107_v6, %v1119_v7 }
 0x15b   :  { %3223 = vmatpush1.bf16.msra.mxu0 %v3768_v4  ;;  %3264 = vmatpush1.bf16.msra.mxu1 %v3770_v8  ;;  %v1128_v4 = vld [vmem:[#allocation10 + $0x640] sm:$0xff] }
 0x15c   :  { %3230 = vmatprep.subr.bf16.mxu0 %v2860_v9  ;;  %3271 = vmatprep.subr.bf16.mxu1 %v2866_v61  ;;  %v1129_v61 = vld [vmem:[#allocation10 + $0x648] sm:$0xff] }
 0x15f   :  { %3231 = vmatpush2.bf16.msra.mxu0 %v2857_v19  ;;  %3272 = vmatpush2.bf16.msra.mxu1 %v2863_v21  ;;  %v3961_v21 = vcombine.high %v1128_v4, %v1140_v5 }
 0x160   :  { %3232 = vmatprep.subr.bf16.mxu0 %v4033_v22  ;;  %3273 = vmatprep.subr.bf16.mxu1 %v4035_v23 }
 0x162   :  { %v2914_v30 = vpop.f32.mrf.mxu0  ;;  %v2955_v46 = vpop.f32.mrf.mxu1 }
 0x163   :  { %3233 = vmatpush2.bf16.msra.mxu0 %v4032_v34  ;;  %3274 = vmatpush2.bf16.msra.mxu1 %v4034_v26  ;;  %v3510_v55 = vadd.f32 %v2914_v30, %v4444_v1  ;;  %v3512_v8 = vadd.f32 %v2955_v46, %v4451_v11  ;;  %v3963_v11 = vcombine.high %v1129_v61, %v1141_v62  ;;  %v1094_v30 = vld [vmem:[#allocation10 + $0x530] sm:$0xff] }
 0x164   :  { %v2916_v50 = vpop.f32.mrf.mxu0  ;;  %3234 = vmatprep.subr.bf16.mxu0 %v4009_v15  ;;  %v2957_v58 = vpop.f32.mrf.mxu1  ;;  %3275 = vmatprep.subr.bf16.mxu1 %v4011_v27  ;;  %v3960_v34 = vcombine.low %v1128_v4, %v1140_v5  ;;  %v3962_v15 = vcombine.low %v1129_v61, %v1141_v62  ;;  %v1035_v61 = vld [vmem:[#allocation10 + $0x358] sm:$0xff] }
 0x165   :  { %v3511_v57 = vadd.f32 %v2916_v50, %v4446_v2  ;;  %v3513_v9 = vadd.f32 %v2957_v58, %v4453_v12  ;;  %v3986_v2 = vcombine.low %v1153_v31, %v1165_v41  ;;  %v1118_v12 = vld [vmem:[#allocation10 + $0x5f0] sm:$0xff]  ;;  %v1083_v31 = vld [vmem:[#allocation10 + $0x4d8] sm:$0xff]  ;;  %v3917_v50 = vcombine.high %v1082_v40, %v1094_v30 }
 0x166   :  { %v2918_v13 = vpop.f32.mrf.mxu0  ;;  %v2959_v14 = vpop.f32.mrf.mxu1  ;;  %v3941_v27 = vcombine.high %v1106_v63, %v1118_v12  ;;  %v1095_v41 = vld [vmem:[#allocation10 + $0x538] sm:$0xff]  ;;  %v3940_v46 = vcombine.low %v1106_v63, %v1118_v12  ;;  %v986_v12 = vld [vmem:[#allocation10 + $0x1d0] sm:$0xff] }
 0x167   :  { %v3558_v10 = vcombine.low %v3510_v55, %v3511_v57  ;;  %3235 = vmatpush2.bf16.msra.mxu0 %v4008_v43  ;;  %v3559_v19 = vcombine.low %v3512_v8, %v3513_v9  ;;  %3276 = vmatpush2.bf16.msra.mxu1 %v4010_v51  ;;  %v3942_v43 = vcombine.low %v1107_v6, %v1119_v7  ;;  %v1070_v55 = vld [vmem:[#allocation10 + $0x470] sm:$0xff]  ;;  %v1059_v57 = vld [vmem:[#allocation10 + $0x418] sm:$0xff] }
 0x168   :  { %v2919_v1 = vpop.f32.mrf.mxu0  ;;  %3236 = vmatprep.subr.bf16.mxu0 %v3985_v52  ;;  %v2960_v23 = vpop.f32.mrf.mxu1  ;;  %3277 = vmatprep.subr.bf16.mxu1 %v3987_v59  ;;  %v3919_v51 = vcombine.high %v1083_v31, %v1095_v41  ;;  %v1058_v52 = vld [vmem:[#allocation10 + $0x410] sm:$0xff]  ;;  %v1071_v58 = vld [vmem:[#allocation10 + $0x478] sm:$0xff]  ;;  %v3916_v59 = vcombine.low %v1082_v40, %v1094_v30  ;;  %v3918_v4 = vcombine.low %v1083_v31, %v1095_v41 }
 0x169   :  { %v3566_v22 = vrot.slane %v3558_v10, %v4439_v60  ;;  %v3573_v24 = vrot.slane %v3559_v19, %v4439_v60  ;;  %v3893_v5 = vcombine.high %v1058_v52, %v1070_v55  ;;  %v3895_v8 = vcombine.high %v1059_v57, %v1071_v58  ;;  %v1034_v9 = vld [vmem:[#allocation10 + $0x350] sm:$0xff]  ;;  %v1047_v62 = vld [vmem:[#allocation10 + $0x3b8] sm:$0xff] }
 0x16a   :  { %v1046_v13 = vld [vmem:[#allocation10 + $0x3b0] sm:$0xff]  ;;  %v3892_v10 = vcombine.low %v1058_v52, %v1070_v55  ;;  %v3894_v14 = vcombine.low %v1059_v57, %v1071_v58  ;;  %v3871_v19 = vcombine.high %v1035_v61, %v1047_v62  ;;  %v987_v6 = vld [vmem:[#allocation10 + $0x1d8] sm:$0xff] }
 0x16b   :  { %3237 = vmatpush2.bf16.msra.mxu0 %v3984_v18  ;;  %v3574_v26 = vcombine.low %v3566_v22, %v3573_v24  ;;  %3278 = vmatpush2.bf16.msra.mxu1 %v3986_v2  ;;  %v3869_v18 = vcombine.high %v1034_v9, %v1046_v13  ;;  %v1010_v1 = vld [vmem:[#allocation10 + $0x290] sm:$0xff]  ;;  %v1023_v22 = vld [vmem:[#allocation10 + $0x2f8] sm:$0xff]  ;;  %v3868_v23 = vcombine.low %v1034_v9, %v1046_v13 }
 0x16c   :  { %3238 = vmatprep.subr.bf16.mxu0 %v3961_v21  ;;  %3279 = vmatprep.subr.bf16.mxu1 %v3963_v11  ;;  %v1022_v2 = vld [vmem:[#allocation10 + $0x2f0] sm:$0xff]  ;;  %v1011_v21 = vld [vmem:[#allocation10 + $0x298] sm:$0xff]  ;;  %v3870_v11 = vcombine.low %v1035_v61, %v1047_v62 }
 0x16d   :  { %3666 = vst [vmem:[#allocation12] sm:$0xff] %v3574_v26  ;;  %v3845_v63 = vcombine.high %v1010_v1, %v1022_v2  ;;  %v998_v24 = vld [vmem:[#allocation10 + $0x230] sm:$0xff]  ;;  %v999_v7 = vld [vmem:[#allocation10 + $0x238] sm:$0xff]  ;;  %v3846_v26 = vcombine.low %v1011_v21, %v1023_v22 }
 0x16e   :  { %v974_v40 = vld [vmem:[#allocation10 + $0x170] sm:$0xff]  ;;  %v963_v30 = vld [vmem:[#allocation10 + $0x118] sm:$0xff]  ;;  %v3820_v41 = vcombine.low %v986_v12, %v998_v24 }
 0x16f   :  { %3239 = vmatpush2.bf16.msra.mxu0 %v3960_v34  ;;  %3280 = vmatpush2.bf16.msra.mxu1 %v3962_v15  ;;  %v3844_v34 = vcombine.low %v1010_v1, %v1022_v2  ;;  %v3821_v15 = vcombine.high %v986_v12, %v998_v24  ;;  %v975_v31 = vld [vmem:[#allocation10 + $0x178] sm:$0xff]  ;;  %v1226_v57 = vld [vmem:[#allocation10 + $0x950] sm:$0xff] }
 0x170   :  { %3290 = vmatprep.subr.bf16.mxu0 %v3941_v27  ;;  %3331 = vmatprep.subr.bf16.mxu1 %v3943_v17  ;;  %v3823_v27 = vcombine.high %v987_v6, %v999_v7  ;;  %v962_v17 = vld [vmem:[#allocation10 + $0x110] sm:$0xff]  ;;  %v3799_v52 = vcombine.high %v963_v30, %v975_v31  ;;  %v939_v55 = vld [vmem:[#allocation10 + $0x58] sm:$0xff]  ;;  %v3798_v9 = vcombine.low %v963_v30, %v975_v31 }
 0x171   :  { %v1238_v58 = vld [vmem:[#allocation10 + $0x9b0] sm:$0xff] }
 0x172   :  { %3241 = vmatmul.mubr.bf16.vlgmr.msra.gmra.mxu0 %v4394_v3  ;;  %3282 = vmatmul.mubr.bf16.vlgmr.msra.gmra.mxu1 %v4394_v3  ;;  %v4061_v61 = vcombine.high %v1226_v57, %v1238_v58  ;;  %v1154_v31 = vld [vmem:[#allocation10 + $0x710] sm:$0xff] }
 0x173   :  { %3291 = vmatpush1.bf16.msra.mxu0 %v3940_v46  ;;  %3332 = vmatpush1.bf16.msra.mxu1 %v3942_v43  ;;  %v3822_v46 = vcombine.low %v987_v6, %v999_v7  ;;  %v3797_v43 = vcombine.high %v962_v17, %v974_v40  ;;  %v1178_v7 = vld [vmem:[#allocation10 + $0x7d0] sm:$0xff] }
 0x174   :  { %3292 = vmatprep.subr.bf16.mxu0 %v3917_v50  ;;  %3333 = vmatprep.subr.bf16.mxu1 %v3919_v51  ;;  %v938_v50 = vld [vmem:[#allocation10 + $0x50] sm:$0xff]  ;;  %v2872_v1 = vand.u32 %v4061_v61, %v4386_v16 }
 0x175   :  { %4074 = vmatprep.mubr.msk.bf16.mxu0 %vm2800_vm2, %v4376_v0  ;;  %4075 = vmatprep.mubr.msk.bf16.mxu1 %vm2800_vm2, %v4376_v0  ;;  %v3847_v0 = vcombine.high %v1011_v21, %v1023_v22  ;;  %v950_v51 = vld [vmem:[#allocation10 + $0xb0] sm:$0xff] }
 0x176   :  { %v3773_v13 = vcombine.high %v938_v50, %v950_v51  ;;  %v1202_v22 = vld [vmem:[#allocation10 + $0x890] sm:$0xff] }
 0x177   :  { %3293 = vmatpush1.bf16.msra.mxu0 %v3916_v59  ;;  %3334 = vmatpush1.bf16.msra.mxu1 %v3918_v4  ;;  %v951_v59 = vld [vmem:[#allocation10 + $0xb8] sm:$0xff] }
 0x178   :  { %3294 = vmatprep.subr.bf16.mxu0 %v3893_v5  ;;  %3335 = vmatprep.subr.bf16.mxu1 %v3895_v8  ;;  %v1227_v4 = vld [vmem:[#allocation10 + $0x958] sm:$0xff]  ;;  %v3796_v8 = vcombine.low %v962_v17, %v974_v40  ;;  %v3775_v62 = vcombine.high %v939_v55, %v951_v59 }
 0x179   :  { %v1239_v5 = vld [vmem:[#allocation10 + $0x9b8] sm:$0xff] }
 0x17a   :  { %v4062_v2 = vcombine.low %v1227_v4, %v1239_v5 }
 0x17b   :  { %3295 = vmatpush1.bf16.msra.mxu0 %v3892_v10  ;;  %3336 = vmatpush1.bf16.msra.mxu1 %v3894_v14  ;;  %v4063_v10 = vcombine.high %v1227_v4, %v1239_v5  ;;  %v3772_v14 = vcombine.low %v938_v50, %v950_v51 }
 0x17c   :  { %3296 = vmatprep.subr.bf16.mxu0 %v3869_v18  ;;  %3337 = vmatprep.subr.bf16.mxu1 %v3871_v19  ;;  %v4060_v18 = vcombine.low %v1226_v57, %v1238_v58  ;;  %v3774_v19 = vcombine.low %v939_v55, %v951_v59  ;;  %v2875_v12 = vand.u32 %v4062_v2, %v4386_v16 }
 0x17d   :  { %v2878_v21 = vand.u32 %v4063_v10, %v4386_v16  ;;  %v1131_v10 = vld [vmem:[#allocation10 + $0x658] sm:$0xff] }
 0x17f   :  { %3297 = vmatpush1.bf16.msra.mxu0 %v3868_v23  ;;  %3338 = vmatpush1.bf16.msra.mxu1 %v3870_v11  ;;  %v1214_v23 = vld [vmem:[#allocation10 + $0x8f0] sm:$0xff]  ;;  %v1203_v11 = vld [vmem:[#allocation10 + $0x898] sm:$0xff] }
 0x180   :  { %3298 = vmatprep.subr.bf16.mxu0 %v3845_v63  ;;  %3339 = vmatprep.subr.bf16.mxu1 %v3847_v0  ;;  %v1215_v63 = vld [vmem:[#allocation10 + $0x8f8] sm:$0xff]  ;;  %v2869_v0 = vand.u32 %v4060_v18, %v4386_v16  ;;  %v4037_v24 = vcombine.high %v1202_v22, %v1214_v23 }
 0x181   :  { %v4039_v6 = vcombine.high %v1203_v11, %v1215_v63  ;;  %v4038_v17 = vcombine.low %v1203_v11, %v1215_v63  ;;  %v1167_v16 = vld [vmem:[#allocation10 + $0x778] sm:$0xff] }
 0x183   :  { %3299 = vmatpush1.bf16.msra.mxu0 %v3844_v34  ;;  %3340 = vmatpush1.bf16.msra.mxu1 %v3846_v26  ;;  %v1190_v34 = vld [vmem:[#allocation10 + $0x830] sm:$0xff]  ;;  %v1179_v26 = vld [vmem:[#allocation10 + $0x7d8] sm:$0xff] }
 0x184   :  { %3300 = vmatprep.subr.bf16.mxu0 %v3821_v15  ;;  %3341 = vmatprep.subr.bf16.mxu1 %v3823_v27  ;;  %v1191_v15 = vld [vmem:[#allocation10 + $0x838] sm:$0xff]  ;;  %v4036_v27 = vcombine.low %v1202_v22, %v1214_v23  ;;  %v4013_v40 = vcombine.high %v1178_v7, %v1190_v34  ;;  %v4012_v51 = vcombine.low %v1178_v7, %v1190_v34 }
 0x185   :  { %v4015_v30 = vcombine.high %v1179_v26, %v1191_v15  ;;  %v4014_v55 = vcombine.low %v1179_v26, %v1191_v15 }
 0x187   :  { %3301 = vmatpush1.bf16.msra.mxu0 %v3820_v41  ;;  %3342 = vmatpush1.bf16.msra.mxu1 %v3822_v46  ;;  %v1166_v41 = vld [vmem:[#allocation10 + $0x770] sm:$0xff] }
 0x188   :  { %3302 = vmatprep.subr.bf16.mxu0 %v3797_v43  ;;  %3343 = vmatprep.subr.bf16.mxu1 %v3799_v52  ;;  %v1155_v43 = vld [vmem:[#allocation10 + $0x718] sm:$0xff]  ;;  %v3989_v57 = vcombine.high %v1154_v31, %v1166_v41 }
 0x189   :  { %v3991_v5 = vcombine.high %v1155_v43, %v1167_v16 }
 0x18b   :  { %3303 = vmatpush1.bf16.msra.mxu0 %v3796_v8  ;;  %3344 = vmatpush1.bf16.msra.mxu1 %v3798_v9  ;;  %v1130_v8 = vld [vmem:[#allocation10 + $0x650] sm:$0xff] }
 0x18c   :  { %3304 = vmatprep.subr.bf16.mxu0 %v3773_v13  ;;  %3345 = vmatprep.subr.bf16.mxu1 %v3775_v62  ;;  %v1142_v9 = vld [vmem:[#allocation10 + $0x6b0] sm:$0xff] }
 0x18d   :  { %v3964_v11 = vcombine.low %v1130_v8, %v1142_v9 }
 0x18f   :  { %3305 = vmatpush1.bf16.msra.mxu0 %v3772_v14  ;;  %3346 = vmatpush1.bf16.msra.mxu1 %v3774_v19  ;;  %v1143_v14 = vld [vmem:[#allocation10 + $0x6b8] sm:$0xff] }
 0x190   :  { %3312 = vmatprep.subr.bf16.mxu0 %v2872_v1  ;;  %3353 = vmatprep.subr.bf16.mxu1 %v2878_v21  ;;  %v3988_v1 = vcombine.low %v1154_v31, %v1166_v41  ;;  %v3965_v21 = vcombine.high %v1130_v8, %v1142_v9 }
 0x193   :  { %3313 = vmatpush2.bf16.msra.mxu0 %v2869_v0  ;;  %3354 = vmatpush2.bf16.msra.mxu1 %v2875_v12  ;;  %v3966_v0 = vcombine.low %v1131_v10, %v1143_v14 }
 0x194   :  { %3314 = vmatprep.subr.bf16.mxu0 %v4037_v24  ;;  %3355 = vmatprep.subr.bf16.mxu1 %v4039_v6 }
 0x196   :  { %v2996_v46 = vpop.f32.mrf.mxu0  ;;  %v3037_v50 = vpop.f32.mrf.mxu1 }
 0x197   :  { %3315 = vmatpush2.bf16.msra.mxu0 %v4036_v27  ;;  %3356 = vmatpush2.bf16.msra.mxu1 %v4038_v17  ;;  %v3514_v58 = vadd.f32 %v2996_v46, %v4481_v48  ;;  %v3516_v13 = vadd.f32 %v3037_v50, %v4485_v53  ;;  %v3967_v53 = vcombine.high %v1131_v10, %v1143_v14 }
 0x198   :  { %v2998_v52 = vpop.f32.mrf.mxu0  ;;  %3316 = vmatprep.subr.bf16.mxu0 %v4013_v40  ;;  %v3039_v4 = vpop.f32.mrf.mxu1  ;;  %3357 = vmatprep.subr.bf16.mxu1 %v4015_v30 }
 0x199   :  { %v3515_v59 = vadd.f32 %v2998_v52, %v4483_v49  ;;  %v3517_v61 = vadd.f32 %v3039_v4, %v4487_v54  ;;  %v3990_v49 = vcombine.low %v1155_v43, %v1167_v16 }
 0x19a   :  { %v3000_v62 = vpop.f32.mrf.mxu0  ;;  %v3041_v19 = vpop.f32.mrf.mxu1 }
 0x19b   :  { %v3575_v18 = vcombine.low %v3514_v58, %v3515_v59  ;;  %3317 = vmatpush2.bf16.msra.mxu0 %v4012_v51  ;;  %v3576_v2 = vcombine.low %v3516_v13, %v3517_v61  ;;  %3358 = vmatpush2.bf16.msra.mxu1 %v4014_v55 }
 0x19c   :  { %v3001_v48 = vpop.f32.mrf.mxu0  ;;  %3318 = vmatprep.subr.bf16.mxu0 %v3989_v57  ;;  %v3042_v23 = vpop.f32.mrf.mxu1  ;;  %3359 = vmatprep.subr.bf16.mxu1 %v3991_v5 }
 0x19d   :  { %v3583_v22 = vrot.slane %v3575_v18, %v4439_v60  ;;  %v3590_v54 = vrot.slane %v3576_v2, %v4439_v60 }
 0x19f   :  { %3319 = vmatpush2.bf16.msra.mxu0 %v3988_v1  ;;  %v3591_v63 = vcombine.low %v3583_v22, %v3590_v54  ;;  %3360 = vmatpush2.bf16.msra.mxu1 %v3990_v49 }
 0x1a0   :  { %3320 = vmatprep.subr.bf16.mxu0 %v3965_v21  ;;  %3361 = vmatprep.subr.bf16.mxu1 %v3967_v53 }
 0x1a1   :  { %3667 = vst [vmem:[#allocation12 + $0x8] sm:$0xff] %v3591_v63 }
 0x1a3   :  { %3321 = vmatpush2.bf16.msra.mxu0 %v3964_v11  ;;  %3362 = vmatpush2.bf16.msra.mxu1 %v3966_v0 }
 0x1a6   :  { %3323 = vmatmul.mubr.bf16.vlgmr.msra.gmra.mxu0 %v4394_v3  ;;  %3364 = vmatmul.mubr.bf16.vlgmr.msra.gmra.mxu1 %v4394_v3 }
 0x1ca   :  { %v3078_v12 = vpop.f32.mrf.mxu0  ;;  %v3119_v24 = vpop.f32.mrf.mxu1 }
 0x1cb   :  { %v3518_v7 = vadd.f32 %v3078_v12, %v4505_v20  ;;  %v3520_v15 = vadd.f32 %v3119_v24, %v4509_v44 }
 0x1cc   :  { %v3080_v6 = vpop.f32.mrf.mxu0  ;;  %v3121_v26 = vpop.f32.mrf.mxu1 }
 0x1cd   :  { %v3519_v34 = vadd.f32 %v3080_v6, %v4507_v36  ;;  %v3521_v27 = vadd.f32 %v3121_v26, %v4511_v45 }
 0x1ce   :  { %v3082_v17 = vpop.f32.mrf.mxu0  ;;  %v3123_v30 = vpop.f32.mrf.mxu1 }
 0x1cf   :  { %v3592_v40 = vcombine.low %v3518_v7, %v3519_v34  ;;  %v3593_v31 = vcombine.low %v3520_v15, %v3521_v27 }
 0x1d0   :  { %v3083_v41 = vpop.f32.mrf.mxu0  ;;  %v3124_v3 = vpop.f32.mrf.mxu1 }
 0x1d1   :  { %v3600_v46 = vrot.slane %v3592_v40, %v4439_v60  ;;  %v3607_v43 = vrot.slane %v3593_v31, %v4439_v60 }
 0x1d3   :  { %v3608_v16 = vcombine.low %v3600_v46, %v3607_v43 }
 0x1d5   :  { %3668 = vst [vmem:[#allocation12 + $0x10] sm:$0xff] %v3608_v16 }
 0x1d6   :  { %4200 = shalt.err (!%p4197_p1)
}
 0x1d7   :  { %3681 = dma.vmem_to_hbm [thread:$0]  %s3679_s4, 768, %s4668_s5, [#allocation4]  }
 0x1d8   :  { %s4251_s5 = smov [#allocation12]  }
 0x1d9   :  { %s3688_s25 = sshll.u32 %s4251_s5, 4  ;;  %s3689_s25 = int_to_ptr.vmem [resolvable:$true] %s3688_s25 }
 0x1da   :  { %s4209_s26 = scalar_lea.vmem %s3689_s25, 768  ;;  %p4214_p3 = scmp.lt.s32.totalorder %s3689_s25, %s3689_s25 }
 0x1db   :  { %p4210_p2 = scmp.ne.s32.totalorder %s3689_s25, %s4209_s26  ;;  %p4215_p4 = scmp.lt.s32.totalorder %s4209_s26, %s4209_s26 }
 0x1dd   :  { %p4216_p5 = por %p4215_p4, %p4214_p3 }
 0x1df   :  { %p4217_p6 = pnand %p4216_p5, %p4210_p2 }
 0x1fe   :  { %v3160_v20 = vpop.f32.mrf.mxu0  ;;  %v3201_v36 = vpop.f32.mrf.mxu1 }
 0x1ff   :  { %v3522_v45 = vadd.f32 %v3160_v20, %v4533_v33  ;;  %v3524_v52 = vadd.f32 %v3201_v36, %v4537_v38 }
 0x200   :  { %v3162_v44 = vpop.f32.mrf.mxu0  ;;  %v3203_v51 = vpop.f32.mrf.mxu1 }
 0x201   :  { %v3523_v50 = vadd.f32 %v3162_v44, %v4535_v37  ;;  %v3525_v55 = vadd.f32 %v3203_v51, %v4539_v42 }
 0x202   :  { %v3164_v57 = vpop.f32.mrf.mxu0  ;;  %v3205_v59 = vpop.f32.mrf.mxu1 }
 0x203   :  { %v3609_v58 = vcombine.low %v3522_v45, %v3523_v50  ;;  %v3610_v4 = vcombine.low %v3524_v52, %v3525_v55 }
 0x204   :  { %v3165_v5 = vpop.f32.mrf.mxu0  ;;  %v3206_v9 = vpop.f32.mrf.mxu1 }
 0x205   :  { %v3617_v8 = vrot.slane %v3609_v58, %v4439_v60  ;;  %v3624_v13 = vrot.slane %v3610_v4, %v4439_v60 }
 0x207   :  { %v3625_v61 = vcombine.low %v3617_v8, %v3624_v13 }
 0x209   :  { %3669 = vst [vmem:[#allocation12 + $0x18] sm:$0xff] %v3625_v61 }
 0x232   :  { %v3242_v33 = vpop.f32.mrf.mxu0  ;;  %v3283_v62 = vpop.f32.mrf.mxu1 }
 0x233   :  { %v3526_v10 = vadd.f32 %v3242_v33, %v4563_v28  ;;  %v3528_v14 = vadd.f32 %v3283_v62, %v4567_v32 }
 0x234   :  { %v3244_v37 = vpop.f32.mrf.mxu0  ;;  %v3285_v42 = vpop.f32.mrf.mxu1 }
 0x235   :  { %v3527_v38 = vadd.f32 %v3244_v37, %v4565_v29  ;;  %v3529_v18 = vadd.f32 %v3285_v42, %v4569_v56 }
 0x236   :  { %v3246_v19 = vpop.f32.mrf.mxu0  ;;  %v3287_v2 = vpop.f32.mrf.mxu1 }
 0x237   :  { %v3626_v1 = vcombine.low %v3526_v10, %v3527_v38  ;;  %v3627_v48 = vcombine.low %v3528_v14, %v3529_v18 }
 0x238   :  { %v3247_v49 = vpop.f32.mrf.mxu0  ;;  %v3288_v22 = vpop.f32.mrf.mxu1 }
 0x239   :  { %v3634_v21 = vrot.slane %v3626_v1, %v4439_v60  ;;  %v3641_v23 = vrot.slane %v3627_v48, %v4439_v60 }
 0x23b   :  { %v3642_v53 = vcombine.low %v3634_v21, %v3641_v23 }
 0x23d   :  { %3670 = vst [vmem:[#allocation12 + $0x20] sm:$0xff] %v3642_v53 }
 0x266   :  { %v3324_v28 = vpop.f32.mrf.mxu0  ;;  %v3365_v54 = vpop.f32.mrf.mxu1 }
 0x267   :  { %v3530_v11 = vadd.f32 %v3324_v28, %v4585_v35  ;;  %v3532_v63 = vadd.f32 %v3365_v54, %v4589_v47 }
 0x268   :  { %v3326_v29 = vpop.f32.mrf.mxu0  ;;  %v3367_v56 = vpop.f32.mrf.mxu1 }
 0x269   :  { %v3531_v32 = vadd.f32 %v3326_v29, %v4587_v25  ;;  %v3533_v0 = vadd.f32 %v3367_v56, %v4591_v39 }
 0x26a   :  { %v3328_v12 = vpop.f32.mrf.mxu0  ;;  %v3369_v6 = vpop.f32.mrf.mxu1 }
 0x26b   :  { %v3643_v24 = vcombine.low %v3530_v11, %v3531_v32  ;;  %v3644_v7 = vcombine.low %v3532_v63, %v3533_v0 }
 0x26c   :  { %v3329_v34 = vpop.f32.mrf.mxu0  ;;  %v3370_v15 = vpop.f32.mrf.mxu1 }
 0x26d   :  { %v3651_v26 = vrot.slane %v3643_v24, %v4439_v60  ;;  %v3658_v27 = vrot.slane %v3644_v7, %v4439_v60 }
 0x26f   :  { %v3659_v35 = vcombine.low %v3651_v26, %v3658_v27 }
 0x271   :  { %3671 = vst [vmem:[#allocation12 + $0x28] sm:$0xff] %v3659_v35 }
 0x272   :  { %4220 = shalt.err (!%p4217_p6)
}
 0x273   :  { %3691 = dma.vmem_to_hbm [thread:$0]  %s3689_s25, 768, %s4669_s6, [#allocation13]  }
 0x274   :  { %4235 = dma.done.wait [#allocation4], 768  }
 0x275   :  { %4236 = vsyncadd [#allocation4], 4294966528 }
 0x276   :  { %4237 = dma.done.wait [#allocation13], 768  }
 0x277   :  { %4238 = vsyncadd [#allocation13], 4294966528 }
 0x278   :  { %3698 = vsyncpa [#allocation3], 1 }
 0x279   :  { %3699 = vsyncpa [#allocation6], 1 }
 0x27a   :  { %3700 = vsyncpa [#allocation9], 1 }
 0x27b   :  { %3701 = vsyncpa [#allocation4], 1 }
 0x27c   :  { %3702 = vsyncpa [#allocation13], 1 }

</bundles_post_ra>
